<compile_context>
chip_gen: v7x
topology: tpu7x:2x2x1
jax: 0.10.0
libtpu: 0.0.40
codegen_flags: <defaults>
</compile_context>

<pallas_src>
import jax
import jax.numpy as jnp
import numpy as np
from jax.experimental import pallas as pl
from jax.experimental.pallas import tpu as pltpu

EFFECT = 50          # self.effect in the torch module
BATCH_BLOCK = 1024   # max batches fused per grid step


def _round_up(x, m):
    return -(-x // m) * m


def _make_kernel(in_w, rh, oh, out_pw,
                 r_g1, r_w2, r_w3, r_w4o, r_wo1b, r_wo2):
    """Kernel factory; all layout constants are static Python ints."""

    def kernel(x_ref, w_ref, b_ref, out_ref):
        bf16 = jnp.bfloat16
        dot = lambda a, b: jnp.dot(a, b, preferred_element_type=jnp.float32)

        # activations in bf16 for the MXU; accumulate / bias / ReLU in f32
        x = x_ref[...].astype(bf16)                              # (bb, in_w)

        # static slices into the single packed bf16 weight array
        g1    = w_ref[r_g1:r_g1 + in_w, 0:rh]      # gathers + relational layer 1
        w2b   = w_ref[r_w2:r_w2 + rh, 0:rh]        # blockdiag(W2)
        w3b   = w_ref[r_w3:r_w3 + rh, 0:rh]        # blockdiag(W3)
        w4o   = w_ref[r_w4o:r_w4o + rh, 0:oh]      # W4 -> receiver agg -> Wo1a (fused)
        wo1bb = w_ref[r_wo1b:r_wo1b + in_w, 0:oh]  # blockdiag(Wo1b), input-row-permuted
        wo2b  = w_ref[r_wo2:r_wo2 + oh, 0:out_pw]  # blockdiag(Wo2), col-permuted + lane-padded

        # f32 biases (separate tiny array; not quantized)
        b1  = b_ref[0:1, 0:rh]
        b2  = b_ref[1:2, 0:rh]
        b3  = b_ref[2:3, 0:rh]
        bo1 = b_ref[3:4, 0:oh]
        bo2 = b_ref[4:5, 0:out_pw]

        h = jnp.maximum(dot(x, g1) + b1, 0.0)                               # (bb, rh)
        h = jnp.maximum(dot(h.astype(bf16), w2b) + b2, 0.0)                 # (bb, rh)
        h = jnp.maximum(dot(h.astype(bf16), w3b) + b3, 0.0)                 # (bb, rh)
        ho = jnp.maximum(dot(h.astype(bf16), w4o) + dot(x, wo1bb) + bo1, 0.0)  # (bb, oh)
        out_ref[...] = (dot(ho.astype(bf16), wo2b) + bo2).astype(out_ref.dtype)

    return kernel


@jax.jit
def inter_network_forward(object_mat, params):
    f32 = jnp.float32
    bf16 = jnp.bfloat16
    B, obj_dim, num_obj = object_mat.shape
    rec = params["rec_rel_mat"].astype(f32)      # (num_obj, num_rel)
    send = params["send_rel_mat"].astype(f32)    # (num_obj, num_rel)
    num_rel = rec.shape[1]
    hid_r = params["w2"].shape[0]
    hid_o = params["wo2"].shape[0]
    eff = params["w4"].shape[1]

    in_w = obj_dim * num_obj        # kernel input width: (d, n) flatten, n minor
    rh = num_rel * hid_r            # fused relational hidden width (r, j), j minor
    oh = num_obj * hid_o            # fused object hidden width     (n, j), j minor
    out_w = obj_dim * num_obj       # real output width: (d, n) flatten, n minor
    out_pw = _round_up(out_w, 128)  # lane-dense padded output width

    w1 = params["w1"].astype(f32)
    w1a, w1b, w1c = w1[:obj_dim], w1[obj_dim:2 * obj_dim], w1[2 * obj_dim:]
    wo1 = params["wo1"].astype(f32)
    wo1a, wo1b, wo1c = wo1[:eff], wo1[eff:eff + obj_dim], wo1[eff + obj_dim:]

    # ---- fold all batch-independent linear structure into constant matrices.
    # Input rows indexed (d, n) with n minor (natural reshape of object_mat);
    # output columns indexed (d, n) with n minor -> no wrapper transposes.
    #   G1[(d,n),(r,j)] = send[n,r]*W1a[d,j] + rec[n,r]*W1b[d,j]
    g1 = (jnp.einsum("nr,dj->dnrj", send, w1a)
          + jnp.einsum("nr,dj->dnrj", rec, w1b)).reshape(in_w, rh)
    b1_all = (params["ra"].astype(f32) @ w1c
              + params["b1"].astype(f32)[None, :]).reshape(1, rh)

    eye_r = jnp.eye(num_rel, dtype=f32)
    eye_o = jnp.eye(num_obj, dtype=f32)
    w2b = jnp.kron(eye_r, params["w2"].astype(f32))                      # (rh, rh)
    w3b = jnp.kron(eye_r, params["w3"].astype(f32))                      # (rh, rh)
    b2_all = jnp.tile(params["b2"].astype(f32), num_rel).reshape(1, rh)
    b3_all = jnp.tile(params["b3"].astype(f32), num_rel).reshape(1, rh)

    # relational output layer -> receiver aggregation -> Wo1a chunk of the first
    # object layer are consecutive *linear* maps (no ReLU between): fold them.
    w4b = jnp.kron(eye_r, params["w4"].astype(f32))                      # (rh, num_rel*eff)
    a_agg = jnp.kron(rec.T, jnp.eye(eff, dtype=f32))                     # (num_rel*eff, num_obj*eff)
    wo1a_b = jnp.kron(eye_o, wo1a)                                       # (num_obj*eff, oh)
    agg_to_oh = a_agg @ wo1a_b
    w4o = w4b @ agg_to_oh                                                # (rh, oh)
    b4_all = jnp.tile(params["b4"].astype(f32), num_rel).reshape(1, num_rel * eff)
    bo1_all = ((params["x"].astype(f32).T @ wo1c
                + params["bo1"].astype(f32)[None, :]).reshape(1, oh)
               + b4_all @ agg_to_oh)

    # Wo1b chunk against the (d, n)-flattened input rows.
    wo1b_b = jnp.einsum("dj,nm->dnmj", wo1b, eye_o).reshape(in_w, oh)
    # Wo2 emitting (d, n)-flattened output columns (drops the final transpose).
    wo2_b = jnp.einsum("jd,nm->njdm", params["wo2"].astype(f32),
                       eye_o).reshape(oh, out_w)
    bo2_all = jnp.repeat(params["bo2"].astype(f32), num_obj).reshape(1, out_w)

    # ---- pack weights into ONE bf16 array (single constant DMA, static
    # 16-row-aligned slices in-kernel); biases stay f32 in a tiny second array.
    pw = max(rh, oh, out_pw)
    r_g1 = 0
    r_w2 = r_g1 + _round_up(in_w, 16)
    r_w3 = r_w2 + _round_up(rh, 16)
    r_w4o = r_w3 + _round_up(rh, 16)
    r_wo1b = r_w4o + _round_up(rh, 16)
    r_wo2 = r_wo1b + _round_up(in_w, 16)
    r_tot = r_wo2 + _round_up(oh, 16)

    packed_w = jnp.zeros((r_tot, pw), f32)
    packed_w = packed_w.at[r_g1:r_g1 + in_w, :rh].set(g1)
    packed_w = packed_w.at[r_w2:r_w2 + rh, :rh].set(w2b)
    packed_w = packed_w.at[r_w3:r_w3 + rh, :rh].set(w3b)
    packed_w = packed_w.at[r_w4o:r_w4o + rh, :oh].set(w4o)
    packed_w = packed_w.at[r_wo1b:r_wo1b + in_w, :oh].set(wo1b_b)
    packed_w = packed_w.at[r_wo2:r_wo2 + oh, :out_w].set(wo2_b)   # cols [out_w:out_pw] stay 0
    packed_w = packed_w.astype(bf16)

    packed_b = jnp.zeros((8, pw), f32)
    packed_b = packed_b.at[0, :rh].set(b1_all[0])
    packed_b = packed_b.at[1, :rh].set(b2_all[0])
    packed_b = packed_b.at[2, :rh].set(b3_all[0])
    packed_b = packed_b.at[3, :oh].set(bo1_all[0])
    packed_b = packed_b.at[4, :out_w].set(bo2_all[0])

    # ---- batch blocking: clamp the block to the real work and split into
    # balanced grid steps (both v7x TensorCores busy; ~free on v5e/v6e).
    n_blocks = max(1, -(-B // BATCH_BLOCK))
    if n_blocks == 1 and B > 64:
        n_blocks = 2                        # give both v7x cores real work
    if n_blocks > 1 and n_blocks % 2:
        n_blocks += 1                       # keep the two cores balanced
    bb = _round_up(-(-B // n_blocks), 16)   # 16-row aligned (bf16 sublane packing)
    b_pad = bb * n_blocks

    x2 = object_mat.reshape(B, in_w)        # free reshape: (d, n) flatten, n minor
    if b_pad != B:
        # fuse the bf16 cast with the tail zero-pad: one XLA pass over x
        x2 = jnp.pad(x2.astype(bf16), ((0, b_pad - B), (0, 0)))
    else:
        x2 = x2.astype(f32)                 # pass through; kernel casts on the fly

    flops = 2 * b_pad * (in_w * rh + 2 * rh * rh + rh * oh + in_w * oh + oh * out_pw)
    bytes_accessed = (x2.size * x2.dtype.itemsize + 2 * r_tot * pw
                      + 4 * 8 * pw + 4 * b_pad * out_pw)
    kernel = _make_kernel(in_w, rh, oh, out_pw,
                          r_g1, r_w2, r_w3, r_w4o, r_wo1b, r_wo2)

    out_flat = pl.pallas_call(
        kernel,
        out_shape=jax.ShapeDtypeStruct((b_pad, out_pw), f32),
        grid=(b_pad // bb,),
        in_specs=[pl.BlockSpec((bb, in_w), lambda i: (i, 0)),
                  # constant index_map -> the DMA is not re-issued across steps
                  pl.BlockSpec((r_tot, pw), lambda i: (0, 0)),
                  pl.BlockSpec((8, pw), lambda i: (0, 0))],
        out_specs=pl.BlockSpec((bb, out_pw), lambda i: (i, 0)),
        compiler_params=pltpu.CompilerParams(
            dimension_semantics=("parallel",),
            vmem_limit_bytes=32 * 1024 * 1024),
        cost_estimate=pl.CostEstimate(flops=flops, transcendentals=0,
                                      bytes_accessed=bytes_accessed),
    )(x2, packed_w, packed_b)

    # lane-dense slab -> real output; columns already (d, n)-ordered, no transpose
    return out_flat[:B, :out_w].reshape(B, obj_dim, num_obj)


def inter_network_reference(object_mat, params):
    """Pure-JAX mirror of the PyTorch forward, for verification."""
    B = object_mat.shape[0]
    rec, send = params["rec_rel_mat"], params["send_rel_mat"]
    ra, x = params["ra"], params["x"]
    o_send = jnp.swapaxes(jnp.einsum("bdn,nr->bdr", object_mat, send), 1, 2)
    o_rec = jnp.swapaxes(jnp.einsum("bdn,nr->bdr", object_mat, rec), 1, 2)
    h = jnp.concatenate([o_send, o_rec, jnp.broadcast_to(ra, (B,) + ra.shape)], axis=2)
    h = jax.nn.relu(h @ params["w1"] + params["b1"])
    h = jax.nn.relu(h @ params["w2"] + params["b2"])
    h = jax.nn.relu(h @ params["w3"] + params["b3"])
    e = h @ params["w4"] + params["b4"]                      # (B, num_rel, EFFECT)
    e = jnp.swapaxes(e, 1, 2)                                # (B, EFFECT, num_rel)
    agg = jnp.swapaxes(jnp.einsum("ber,rn->ben", e, rec.T), 1, 2)  # (B, num_obj, EFFECT)
    om_t = jnp.swapaxes(object_mat, 1, 2)                    # (B, num_obj, obj_dim)
    o_in = jnp.concatenate(
        [agg, om_t, jnp.broadcast_to(x.T, (B,) + x.T.shape)], axis=2)
    ho = jax.nn.relu(o_in @ params["wo1"] + params["bo1"])
    out = ho @ params["wo2"] + params["bo2"]                 # (B, num_obj, obj_dim)
    return jnp.swapaxes(out, 1, 2)                           # (B, obj_dim, num_obj)


def make_params(key, num_obj, num_rel, obj_dim, rel_sz, hid_r, hid_o):
    ks = jax.random.split(key, 16)

    def linear(kw, kb, fan_in, fan_out):
        bound = 1.0 / np.sqrt(fan_in)
        w = jax.random.uniform(kw, (fan_in, fan_out), jnp.float32, -bound, bound)
        b = jax.random.uniform(kb, (fan_out,), jnp.float32, -bound, bound)
        return w, b

    w1, b1 = linear(ks[0], ks[1], 2 * obj_dim + rel_sz, hid_r)
    w2, b2 = linear(ks[2], ks[3], hid_r, hid_r)
    w3, b3 = linear(ks[4], ks[5], hid_r, hid_r)
    w4, b4 = linear(ks[6], ks[7], hid_r, EFFECT)
    wo1, bo1 = linear(ks[8], ks[9], obj_dim + EFFECT + rel_sz, hid_o)
    wo2, bo2 = linear(ks[10], ks[11], hid_o, obj_dim)

    # relation matrices (one-hot sender/receiver per relation, deterministic)
    recv_idx = jnp.arange(num_rel) % num_obj
    send_idx = (jnp.arange(num_rel) + 1) % num_obj
    rec_rel = jax.nn.one_hot(recv_idx, num_obj, dtype=jnp.float32).T   # (num_obj, num_rel)
    send_rel = jax.nn.one_hot(send_idx, num_obj, dtype=jnp.float32).T  # (num_obj, num_rel)

    # rel_sz != 1 branch of __init__: ra / x are trainable Parameters
    # (zero-init in torch); use small random values to stand in for trained
    # weights so the ra / x paths are numerically exercised.
    ra = jax.random.uniform(ks[12], (num_rel, rel_sz), jnp.float32, -0.5, 0.5)
    x = jax.random.uniform(ks[13], (rel_sz, num_obj), jnp.float32, -0.5, 0.5)

    return dict(rec_rel_mat=rec_rel, send_rel_mat=send_rel, ra=ra, x=x,
                w1=w1, b1=b1, w2=w2, b2=b2, w3=w3, b3=b3, w4=w4, b4=b4,
                wo1=wo1, bo1=bo1, wo2=wo2, bo2=bo2)


if __name__ == "__main__":
    obj_dim, num_obj, num_rel, rel_sz = 5, 4, 6, 3
    hid_r, hid_o = 32, 32

    key = jax.random.PRNGKey(0)
    k1, k2, k3, k_par = jax.random.split(key, 4)
    params = make_params(k_par, num_obj, num_rel, obj_dim, rel_sz, hid_r, hid_o)

    # batch=300: two balanced 160-row blocks (megacore split) + tail padding (bf16 x path)
    # batch=256: two 128-row blocks, no padding (f32 pass-through x path)
    # batch=2:   single clamped 16-row block
    for batch, kk in ((300, k1), (256, k2), (2, k3)):
        object_mat = jax.random.normal(kk, (batch, obj_dim, num_obj), jnp.float32)
        out = jax.block_until_ready(inter_network_forward(object_mat, params))
        ref = jax.block_until_ready(inter_network_reference(object_mat, params))
        assert out.shape == (batch, obj_dim, num_obj)
        # bf16 MXU operands (f32 accumulation/biases) vs. a pure-f32 reference:
        # relaxed from 1e-3 to 3e-2, still far below any structural-bug error.
        np.testing.assert_allclose(np.asarray(out), np.asarray(ref),
                                   rtol=3e-2, atol=3e-2)

    print("KERNEL_OK")
</pallas_src>

<mosaic_0001>
module attributes {stable_mosaic.version = 11 : i64} {
  func.func @kernel(%arg0: i32, %arg1: memref<160x20xbf16, #tpu.memory_space<vmem>>, %arg2: memref<768x192xbf16, #tpu.memory_space<vmem>>, %arg3: memref<8x192xf32, #tpu.memory_space<vmem>>, %arg4: memref<160x128xf32, #tpu.memory_space<vmem>>) attributes {dimension_semantics = [#tpu.dimension_semantics<parallel>], iteration_bounds = array<i64: 2>, scalar_prefetch = 0 : i64, scratch_operands = 0 : i64, tpu.core_type = #tpu.core_type<tc>, window_params = [{transform_indices = @transform_0, window_bounds = array<i64: 160, 20>}, {pipeline_mode = #tpu.pipeline_mode<synchronous>, transform_indices = @transform_1, window_bounds = array<i64: 768, 192>}, {pipeline_mode = #tpu.pipeline_mode<synchronous>, transform_indices = @transform_2, window_bounds = array<i64: 8, 192>}, {transform_indices = @transform_3, window_bounds = array<i64: 160, 128>}]} {
    %c0 = arith.constant 0 : index
    %c0_0 = arith.constant 0 : index
    %0 = vector.load %arg1[%c0, %c0_0] : memref<160x20xbf16, #tpu.memory_space<vmem>>, vector<160x20xbf16>
    %c0_1 = arith.constant 0 : index
    %c0_2 = arith.constant 0 : index
    %1 = vector.load %arg2[%c0_1, %c0_2] : memref<768x192xbf16, #tpu.memory_space<vmem>>, vector<20x192xbf16>
    %c32 = arith.constant 32 : index
    %c0_3 = arith.constant 0 : index
    %2 = vector.load %arg2[%c32, %c0_3] : memref<768x192xbf16, #tpu.memory_space<vmem>>, vector<192x192xbf16>
    %c224 = arith.constant 224 : index
    %c0_4 = arith.constant 0 : index
    %3 = vector.load %arg2[%c224, %c0_4] : memref<768x192xbf16, #tpu.memory_space<vmem>>, vector<192x192xbf16>
    %c416 = arith.constant 416 : index
    %c0_5 = arith.constant 0 : index
    %4 = vector.load %arg2[%c416, %c0_5] : memref<768x192xbf16, #tpu.memory_space<vmem>>, vector<192x128xbf16>
    %c608 = arith.constant 608 : index
    %c0_6 = arith.constant 0 : index
    %5 = vector.load %arg2[%c608, %c0_6] : memref<768x192xbf16, #tpu.memory_space<vmem>>, vector<20x128xbf16>
    %c640 = arith.constant 640 : index
    %c0_7 = arith.constant 0 : index
    %6 = vector.load %arg2[%c640, %c0_7] : memref<768x192xbf16, #tpu.memory_space<vmem>>, vector<128x128xbf16>
    %c0_8 = arith.constant 0 : index
    %c0_9 = arith.constant 0 : index
    %7 = vector.load %arg3[%c0_8, %c0_9] : memref<8x192xf32, #tpu.memory_space<vmem>>, vector<1x192xf32>
    %c1 = arith.constant 1 : index
    %c0_10 = arith.constant 0 : index
    %8 = vector.load %arg3[%c1, %c0_10] : memref<8x192xf32, #tpu.memory_space<vmem>>, vector<1x192xf32>
    %c2 = arith.constant 2 : index
    %c0_11 = arith.constant 0 : index
    %9 = vector.load %arg3[%c2, %c0_11] : memref<8x192xf32, #tpu.memory_space<vmem>>, vector<1x192xf32>
    %c3 = arith.constant 3 : index
    %c0_12 = arith.constant 0 : index
    %10 = vector.load %arg3[%c3, %c0_12] : memref<8x192xf32, #tpu.memory_space<vmem>>, vector<1x128xf32>
    %c4 = arith.constant 4 : index
    %c0_13 = arith.constant 0 : index
    %11 = vector.load %arg3[%c4, %c0_13] : memref<8x192xf32, #tpu.memory_space<vmem>>, vector<1x128xf32>
    %cst = arith.constant dense<0.000000e+00> : vector<160x192xf32>
    %12 = tpu.matmul %0, %1, %cst {dimension_numbers = #tpu.dot_dimension_numbers<[1], [0], [0], [1], [0, 0, 1, 1], [], []>} : vector<160x20xbf16>, vector<20x192xbf16>, vector<160x192xf32> -> vector<160x192xf32>
    %13 = vector.broadcast %7 : vector<1x192xf32> to vector<160x192xf32>
    %14 = arith.addf %12, %13 : vector<160x192xf32>
    %cst_14 = arith.constant 0.000000e+00 : f32
    %15 = vector.broadcast %cst_14 : f32 to vector<160x192xf32>
    %16 = arith.maximumf %14, %15 : vector<160x192xf32>
    %17 = arith.truncf %16 : vector<160x192xf32> to vector<160x192xbf16>
    %cst_15 = arith.constant dense<0.000000e+00> : vector<160x192xf32>
    %18 = tpu.matmul %17, %2, %cst_15 {dimension_numbers = #tpu.dot_dimension_numbers<[1], [0], [0], [1], [0, 0, 1, 1], [], []>} : vector<160x192xbf16>, vector<192x192xbf16>, vector<160x192xf32> -> vector<160x192xf32>
    %19 = vector.broadcast %8 : vector<1x192xf32> to vector<160x192xf32>
    %20 = arith.addf %18, %19 : vector<160x192xf32>
    %cst_16 = arith.constant 0.000000e+00 : f32
    %21 = vector.broadcast %cst_16 : f32 to vector<160x192xf32>
    %22 = arith.maximumf %20, %21 : vector<160x192xf32>
    %23 = arith.truncf %22 : vector<160x192xf32> to vector<160x192xbf16>
    %cst_17 = arith.constant dense<0.000000e+00> : vector<160x192xf32>
    %24 = tpu.matmul %23, %3, %cst_17 {dimension_numbers = #tpu.dot_dimension_numbers<[1], [0], [0], [1], [0, 0, 1, 1], [], []>} : vector<160x192xbf16>, vector<192x192xbf16>, vector<160x192xf32> -> vector<160x192xf32>
    %25 = vector.broadcast %9 : vector<1x192xf32> to vector<160x192xf32>
    %26 = arith.addf %24, %25 : vector<160x192xf32>
    %cst_18 = arith.constant 0.000000e+00 : f32
    %27 = vector.broadcast %cst_18 : f32 to vector<160x192xf32>
    %28 = arith.maximumf %26, %27 : vector<160x192xf32>
    %29 = arith.truncf %28 : vector<160x192xf32> to vector<160x192xbf16>
    %cst_19 = arith.constant dense<0.000000e+00> : vector<160x128xf32>
    %30 = tpu.matmul %29, %4, %cst_19 {dimension_numbers = #tpu.dot_dimension_numbers<[1], [0], [0], [1], [0, 0, 1, 1], [], []>} : vector<160x192xbf16>, vector<192x128xbf16>, vector<160x128xf32> -> vector<160x128xf32>
    %cst_20 = arith.constant dense<0.000000e+00> : vector<160x128xf32>
    %31 = tpu.matmul %0, %5, %cst_20 {dimension_numbers = #tpu.dot_dimension_numbers<[1], [0], [0], [1], [0, 0, 1, 1], [], []>} : vector<160x20xbf16>, vector<20x128xbf16>, vector<160x128xf32> -> vector<160x128xf32>
    %32 = arith.addf %30, %31 : vector<160x128xf32>
    %33 = vector.broadcast %10 : vector<1x128xf32> to vector<160x128xf32>
    %34 = arith.addf %32, %33 : vector<160x128xf32>
    %cst_21 = arith.constant 0.000000e+00 : f32
    %35 = vector.broadcast %cst_21 : f32 to vector<160x128xf32>
    %36 = arith.maximumf %34, %35 : vector<160x128xf32>
    %37 = arith.truncf %36 : vector<160x128xf32> to vector<160x128xbf16>
    %cst_22 = arith.constant dense<0.000000e+00> : vector<160x128xf32>
    %38 = tpu.matmul %37, %6, %cst_22 {dimension_numbers = #tpu.dot_dimension_numbers<[1], [0], [0], [1], [0, 0, 1, 1], [], []>} : vector<160x128xbf16>, vector<128x128xbf16>, vector<160x128xf32> -> vector<160x128xf32>
    %39 = vector.broadcast %11 : vector<1x128xf32> to vector<160x128xf32>
    %40 = arith.addf %38, %39 : vector<160x128xf32>
    %c0_23 = arith.constant 0 : index
    %c0_24 = arith.constant 0 : index
    %41 = vector.load %arg4[%c0_23, %c0_24] : memref<160x128xf32, #tpu.memory_space<vmem>>, vector<160x128xf32>
    tpu.vector_store %arg4[%c0_23, %c0_24], %40 {strides = array<i32>} : memref<160x128xf32, #tpu.memory_space<vmem>>, vector<160x128xf32>,
    return
  }
  func.func @transform_0(%arg0: i32) -> (i32, i32) {
    %c0_i32 = arith.constant 0 : i32
    %c0_i32_0 = arith.constant 0 : i32
    return %arg0, %c0_i32 : i32, i32
  }
  func.func @transform_1(%arg0: i32) -> (i32, i32) {
    %c0_i32 = arith.constant 0 : i32
    %c0_i32_0 = arith.constant 0 : i32
    %c0_i32_1 = arith.constant 0 : i32
    return %c0_i32, %c0_i32_0 : i32, i32
  }
  func.func @transform_2(%arg0: i32) -> (i32, i32) {
    %c0_i32 = arith.constant 0 : i32
    %c0_i32_0 = arith.constant 0 : i32
    %c0_i32_1 = arith.constant 0 : i32
    return %c0_i32, %c0_i32_0 : i32, i32
  }
  func.func @transform_3(%arg0: i32) -> (i32, i32) {
    %c0_i32 = arith.constant 0 : i32
    %c0_i32_0 = arith.constant 0 : i32
    return %arg0, %c0_i32 : i32, i32
  }
}

</mosaic_0001>

<bundles_post_ra>
// kernel: tile.26
= control target key start
LH: loop header
LB: loop body
LE: loop exit
PB: predicated region body
PF: predicated region fallthrough
CT: control target
= control target key end

     0   :  { %s22_s0 = inlined_call_operand.vmem [shape: f32[50], index: 0, kind: input, shape index: {}]   ;;  %s23_s1 = inlined_call_operand.vmem [shape: f32[6,50], index: 1, kind: output, shape index: {}]  }
   0x1   :  { %v4_v0 = vld [vmem:[%s22_s0] ss:$0 sm:$0xff] }
   0x2   :  { %5 = vst [vmem:[%s23_s1] sm:$0xff] %v4_v0 }

// kernel: tile.18
= control target key start
LH: loop header
LB: loop body
LE: loop exit
PB: predicated region body
PF: predicated region fallthrough
CT: control target
= control target key end

     0   :  { %s22_s0 = inlined_call_operand.vmem [shape: f32[32], index: 0, kind: input, shape index: {}]   ;;  %s23_s1 = inlined_call_operand.vmem [shape: f32[6,32], index: 1, kind: output, shape index: {}]  }
   0x1   :  { %v4_v0 = vld [vmem:[%s22_s0] ss:$0 sm:$0xff] }
   0x2   :  { %5 = vst [vmem:[%s23_s1] sm:$0xff] %v4_v0 }

// kernel: inter_network_forward.1
= control target key start
LH: loop header
LB: loop body
LE: loop exit
PB: predicated region body
PF: predicated region fallthrough
CT: control target
= control target key end

     0   :  { %s2333_s12 = smov 0   ;;  %s2927_s0 = inlined_call_operand.vmem [shape: bf16[320,20], index: 0, kind: input, shape index: {}]   ;;  %s2928_s1 = inlined_call_operand.vmem [shape: bf16[768,192], index: 1, kind: input, shape index: {}]   ;;  %s2929_s2 = inlined_call_operand.vmem [shape: f32[8,192], index: 2, kind: input, shape index: {}]   ;;  %s2930_s3 = inlined_call_operand.vmem [shape: f32[320,128], index: 3, kind: output, shape index: {}]  }
   0x1 LB: > { %s1939_s13 = sadd.s32 4294967295, %s2310_s12   ;;  %p1943_p0 = scmp.ge.s32.totalorder %s2310_s12, 1  ;;  %s2310_s12 = sphi %s2333_s12, %s13_s12  }
   0x2   : > { %p138_p1 = scmp.lt.s32.totalorder %s2310_s12, 3 }
   0x4   : > { %p139_p2 = pnand %p1943_p0, %p138_p1 }
   0x5   : > { %v2189_v0 = vld [vmem:[%s2928_s1 + $0x4] ss:$8 sps:$4 sm:$0xff] (!%p139_p2)   ;;  %v2191_v1 = vld [vmem:[%s2928_s1] ss:$8 sps:$4 sm:$0xff] (!%p139_p2)   ;;  %v197_v2 = vld [vmem:[%s2928_s1 + $0x10] sm:$0x33] (!%p139_p2)  ;;  %v297_v58 = vlaneseq (!%p139_p2) }
   0x6   : > { %142 = sbr.rel (%p139_p2) target bundleno = 1195 (0x4ab), region = 32  ;;  %vm403_vm0 = vcmask (!%p139_p2), 1041408   ;;  %v2312_v3 = vmov (!%p139_p2), 0   ;;  %410 = vmatprep.subr.bf16.mxu0 (!%p139_p2), %v2189_v0  ;;  %v1961_v4 = vcombine.high (!%p139_p2), %v197_v2, %v197_v2  ;;  %v1960_v5 = vcombine.low (!%p139_p2), %v197_v2, %v197_v2  ;;  %2175 = vmatprep.subr.bf16.mxu1 (!%p139_p2), %v2189_v0  ;;  %v2206_v7 = vld [vmem:[%s2928_s1 + $0x24] ss:$8 sps:$4 sm:$0xff] (!%p139_p2)  }
   0x7   : > { %442 = vmatprep.mubr.bf16.mxu0 (!%p139_p2), %v2312_v3  ;;  %s162_s20 = smul.u32 (!%p139_p2), 20, %s1939_s13  ;;  %502 = vmatprep.mubr.bf16.mxu1 (!%p139_p2), %v2312_v3  ;;  %vm372_vm1 = vcmask (!%p139_p2), 162816   ;;  %v2204_v9 = vld [vmem:[%s2928_s1 + $0x20] ss:$8 sps:$4 sm:$0xff] (!%p139_p2)   ;;  %v2209_v10 = vld [vmem:[%s2928_s1 + $0x34] ss:$8 sps:$4 sm:$0xff] (!%p139_p2)  }
   0x8   : > { %411 = vmatpush1.bf16.msra.mxu0 (!%p139_p2), %v2191_v1  ;;  %2177 = vmatpush1.bf16.msra.mxu1 (!%p139_p2), %v2191_v1  ;;  %v405_v6 = vsel (!%p139_p2), %vm403_vm0, %v1960_v5, 0  ;;  %v2207_v13 = vld [vmem:[%s2928_s1 + $0x30] ss:$8 sps:$4 sm:$0xff] (!%p139_p2)   ;;  %v2212_v14 = vld [vmem:[%s2928_s1 + $0x44] ss:$8 sps:$4 sm:$0xff] (!%p139_p2)   ;;  %v298_v61 = vshrl.u32 (!%p139_p2), %v297_v58, 7 }
   0x9   : > { %p163_p3 = scmp.lt.s32.totalorder (!%p139_p2), %s162_s20, 39  ;;  %1962 = vmatprep.subr.msk.bf16.mxu0 (!%p139_p2), %vm403_vm0, %v1961_v4  ;;  %2176 = vmatprep.subr.msk.bf16.mxu1 (!%p139_p2), %vm403_vm0, %v1961_v4  ;;  %v2210_v16 = vld [vmem:[%s2928_s1 + $0x40] ss:$8 sps:$4 sm:$0xff] (!%p139_p2)   ;;  %v2215_v18 = vld [vmem:[%s2928_s1 + $0x54] ss:$8 sps:$4 sm:$0xff] (!%p139_p2)   ;;  %vm734_vm2 = vcmask (!%p139_p2), 523264  }
   0xa   : > { %v2213_v19 = vld [vmem:[%s2928_s1 + $0x50] ss:$8 sps:$4 sm:$0xff] (!%p139_p2)   ;;  %v2218_v20 = vld [vmem:[%s2928_s1 + $0x64] ss:$8 sps:$4 sm:$0xff] (!%p139_p2)   ;;  %v2216_v22 = vld [vmem:[%s2928_s1 + $0x60] ss:$8 sps:$4 sm:$0xff] (!%p139_p2)  }
   0xb   : > { %v2221_v24 = vld [vmem:[%s2928_s1 + $0x74] ss:$8 sps:$4 sm:$0xff] (!%p139_p2)   ;;  %v2219_v25 = vld [vmem:[%s2928_s1 + $0x70] ss:$8 sps:$4 sm:$0xff] (!%p139_p2)   ;;  %v2224_v26 = vld [vmem:[%s2928_s1 + $0x84] ss:$8 sps:$4 sm:$0xff] (!%p139_p2)  }
   0xc   : > { %413 = vmatpush1.bf16.msra.mxu0 (!%p139_p2), %v405_v6  ;;  %2178 = vmatpush1.bf16.msra.mxu1 (!%p139_p2), %v405_v6  ;;  %v2222_v28 = vld [vmem:[%s2928_s1 + $0x80] ss:$8 sps:$4 sm:$0xff] (!%p139_p2)   ;;  %v2227_v30 = vld [vmem:[%s2928_s1 + $0x94] ss:$8 sps:$4 sm:$0xff] (!%p139_p2)   ;;  %v2225_v31 = vld [vmem:[%s2928_s1 + $0x90] ss:$8 sps:$4 sm:$0xff] (!%p139_p2)  }
   0xd   : > { %s2932_s20 = smov (!%p163_p3, %s162_s20), 39  ;;  %765 = vmatprep.subr.bf16.mxu1 %v2206_v7  ;;  %v2230_v32 = vld [vmem:[%s2928_s1 + $0xa4] ss:$8 sps:$4 sm:$0xff]   ;;  %v2228_v33 = vld [vmem:[%s2928_s1 + $0xa0] ss:$8 sps:$4 sm:$0xff]   ;;  %v2535_v63 = vsub.s32 0, %v298_v61 }
   0xe   : > { %s1944_s23 = sshll.u32 %s2932_s20, 2  ;;  %v2233_v35 = vld [vmem:[%s2928_s1 + $0xb4] ss:$8 sps:$4 sm:$0xff]   ;;  %v2231_v36 = vld [vmem:[%s2928_s1 + $0xb0] ss:$8 sps:$4 sm:$0xff]   ;;  %v2540_v1 = vsub.s32 1, %v298_v61 }
   0xf   : > { %s2364_s26 = scalar_lea.vmem %s2927_s0, %s1944_s23  ;;  %v2236_v37 = vld [vmem:[%s2928_s1 + $0xc4] ss:$8 sps:$4 sm:$0xff]   ;;  %v2234_v38 = vld [vmem:[%s2928_s1 + $0xc0] ss:$8 sps:$4 sm:$0xff]   ;;  %v2239_v39 = vld [vmem:[%s2928_s1 + $0xd4] ss:$8 sps:$4 sm:$0xff]  }
  0x10   : > { %v2367_v8 = vld [vmem:[%s2364_s26] sm:$0xff]   ;;  %v2195_v11 = vld [vmem:[%s2364_s26 + $0x8] sm:$0xff]   ;;  %v2200_v12 = vld [vmem:[%s2364_s26 + $0x30] sm:$0xff]   ;;  %s1945_s28 = sshll.u32 %s2932_s20, 3 }
  0x11   : > { %1963 = vmatmul.mubr.msk.bf16.vlgmr.msra.gmra.mrb[0].mxu0 %vm372_vm1, %v2367_v8  ;;  %1969 = vmatmul.mubr.msk.bf16.vlgmr.msra.gmra.mrb[0].mxu1 %vm372_vm1, %v2200_v12  ;;  %v2201_v15 = vld [vmem:[%s2364_s26 + $0x38] sm:$0xff]   ;;  %v2196_v17 = vld [vmem:[%s2364_s26 + $0x10] sm:$0xff]   ;;  %v2202_v21 = vld [vmem:[%s2364_s26 + $0x40] sm:$0xff]   ;;  %s2902_s6 = scalar_lea.vmem %s2930_s3, %s1945_s28 }
  0x12   : > { %452 = vmatprep.mubr.bf16.mxu0 %v2312_v3  ;;  %512 = vmatprep.mubr.bf16.mxu1 %v2312_v3  ;;  %v2197_v23 = vld [vmem:[%s2364_s26 + $0x18] sm:$0xff]   ;;  %v2426_v27 = vld [vmem:[%s2364_s26 + $0x48] sm:$0xff]   ;;  %v2433_v29 = vld [vmem:[%s2364_s26 + $0x20] sm:$0xff]  }
  0x13   : > { %766 = vmatpush1.bf16.msra.mxu1 %v2204_v9  ;;  %v2453_v34 = vld [vmem:[%s2364_s26 + $0x28] sm:$0xff]   ;;  %v2237_v40 = vld [vmem:[%s2928_s1 + $0xd0] ss:$8 sps:$4 sm:$0xff]   ;;  %v2245_v43 = vld [vmem:[%s2928_s1 + $0xf4] ss:$8 sps:$4 sm:$0xff]  }
  0x14   : > { %767 = vmatprep.subr.bf16.mxu1 %v2209_v10  ;;  %v2240_v41 = vld [vmem:[%s2928_s1 + $0xe0] ss:$8 sps:$4 sm:$0xff]   ;;  %v2242_v42 = vld [vmem:[%s2928_s1 + $0xe4] ss:$8 sps:$4 sm:$0xff]   ;;  %v2243_v44 = vld [vmem:[%s2928_s1 + $0xf0] ss:$8 sps:$4 sm:$0xff]  }
  0x15   : > { %1119 = vmatprep.subr.bf16.mxu0 %v2242_v42  ;;  %v2248_v45 = vld [vmem:[%s2928_s1 + $0x104] ss:$8 sps:$4 sm:$0xff]   ;;  %v2246_v46 = vld [vmem:[%s2928_s1 + $0x100] ss:$8 sps:$4 sm:$0xff]   ;;  %v2251_v47 = vld [vmem:[%s2928_s1 + $0x114] ss:$8 sps:$4 sm:$0xff]  }
  0x16   : > { %1120 = vmatpush1.bf16.msra.mxu0 %v2240_v41  ;;  %v2249_v48 = vld [vmem:[%s2928_s1 + $0x110] ss:$8 sps:$4 sm:$0xff]   ;;  %v2254_v49 = vld [vmem:[%s2928_s1 + $0x124] ss:$8 sps:$4 sm:$0xff]   ;;  %v2252_v50 = vld [vmem:[%s2928_s1 + $0x120] ss:$8 sps:$4 sm:$0xff]  }
  0x17   : > { %768 = vmatpush1.bf16.msra.mxu1 %v2207_v13  ;;  %1121 = vmatprep.subr.bf16.mxu0 %v2245_v43  ;;  %v2257_v51 = vld [vmem:[%s2928_s1 + $0x134] ss:$8 sps:$4 sm:$0xff]   ;;  %v2255_v52 = vld [vmem:[%s2928_s1 + $0x130] ss:$8 sps:$4 sm:$0xff]   ;;  %v2260_v53 = vld [vmem:[%s2928_s1 + $0x144] ss:$8 sps:$4 sm:$0xff]  }
  0x18   : > { %769 = vmatprep.subr.bf16.mxu1 %v2212_v14  ;;  %v2258_v54 = vld [vmem:[%s2928_s1 + $0x140] ss:$8 sps:$4 sm:$0xff]   ;;  %v2263_v55 = vld [vmem:[%s2928_s1 + $0x154] ss:$8 sps:$4 sm:$0xff]   ;;  %v2261_v56 = vld [vmem:[%s2928_s1 + $0x150] ss:$8 sps:$4 sm:$0xff]  }
  0x19   : > { %1964 = vmatmul.mubr.msk.bf16.gmra.mrb[4].mxu0 %vm372_vm1, %v2195_v11  ;;  %1970 = vmatmul.mubr.msk.bf16.gmra.mrb[4].mxu1 %vm372_vm1, %v2201_v15  ;;  %v2266_v57 = vld [vmem:[%s2928_s1 + $0x164] ss:$8 sps:$4 sm:$0xff]   ;;  %v2264_v59 = vld [vmem:[%s2928_s1 + $0x160] ss:$8 sps:$4 sm:$0xff]   ;;  %v2269_v60 = vld [vmem:[%s2928_s1 + $0x174] ss:$8 sps:$4 sm:$0xff]  }
  0x1a   : > { %462 = vmatprep.mubr.bf16.mxu0 %v2312_v3  ;;  %522 = vmatprep.mubr.bf16.mxu1 %v2312_v3  ;;  %v2267_v62 = vld [vmem:[%s2928_s1 + $0x170] ss:$8 sps:$4 sm:$0xff]   ;;  %v289_v0 = vld [vmem:[%s2929_s2] ss:$8 sm:$0x3] }
  0x1b   : > { %770 = vmatpush1.bf16.msra.mxu1 %v2210_v16  ;;  %1122 = vmatpush1.bf16.msra.mxu0 %v2243_v44  ;;  %v2543_v2 = vrot.slane %v289_v0, %v2535_v63  ;;  %v2546_v4 = vrot.slane %v289_v0, %v2540_v1 }
  0x1c   : > { %771 = vmatprep.subr.bf16.mxu1 %v2215_v18  ;;  %1123 = vmatprep.subr.bf16.mxu0 %v2248_v45 }
  0x1f   : > { %772 = vmatpush1.bf16.msra.mxu1 %v2213_v19  ;;  %1124 = vmatpush1.bf16.msra.mxu0 %v2246_v46 }
  0x20   : > { %773 = vmatprep.subr.bf16.mxu1 %v2218_v20  ;;  %1125 = vmatprep.subr.bf16.mxu0 %v2251_v47 }
  0x21   : > { %1965 = vmatmul.mubr.msk.bf16.gmra.mrb[8].mxu0 %vm372_vm1, %v2196_v17  ;;  %1971 = vmatmul.mubr.msk.bf16.gmra.mrb[8].mxu1 %vm372_vm1, %v2202_v21 }
  0x22   : > { %472 = vmatprep.mubr.bf16.mxu0 %v2312_v3  ;;  %532 = vmatprep.mubr.bf16.mxu1 %v2312_v3 }
  0x23   : > { %774 = vmatpush1.bf16.msra.mxu1 %v2216_v22  ;;  %1126 = vmatpush1.bf16.msra.mxu0 %v2249_v48 }
  0x24   : > { %775 = vmatprep.subr.bf16.mxu1 %v2221_v24  ;;  %1127 = vmatprep.subr.bf16.mxu0 %v2254_v49 }
  0x27   : > { %776 = vmatpush1.bf16.msra.mxu1 %v2219_v25  ;;  %1128 = vmatpush1.bf16.msra.mxu0 %v2252_v50 }
  0x28   : > { %777 = vmatprep.subr.bf16.mxu1 %v2224_v26  ;;  %1129 = vmatprep.subr.bf16.mxu0 %v2257_v51 }
  0x29   : > { %1966 = vmatmul.mubr.msk.bf16.gmra.mrb[12].mxu0 %vm372_vm1, %v2197_v23  ;;  %1972 = vmatmul.mubr.msk.bf16.gmra.mrb[12].mxu1 %vm372_vm1, %v2426_v27 }
  0x2a   : > { %482 = vmatprep.mubr.bf16.mxu0 %v2312_v3 }
  0x2b   : > { %778 = vmatpush1.bf16.msra.mxu1 %v2222_v28  ;;  %1130 = vmatpush1.bf16.msra.mxu0 %v2255_v52 }
  0x2c   : > { %779 = vmatprep.subr.bf16.mxu1 %v2227_v30  ;;  %1131 = vmatprep.subr.bf16.mxu0 %v2260_v53 }
  0x2f   : > { %780 = vmatpush1.bf16.msra.mxu1 %v2225_v31  ;;  %1132 = vmatpush1.bf16.msra.mxu0 %v2258_v54 }
  0x30   : > { %781 = vmatprep.subr.bf16.mxu1 %v2230_v32  ;;  %1133 = vmatprep.subr.bf16.mxu0 %v2263_v55 }
  0x31   : > { %1967 = vmatmul.mubr.msk.bf16.gmra.mrb[16].mxu0 %vm372_vm1, %v2433_v29 }
  0x32   : > { %492 = vmatprep.mubr.bf16.mxu0 %v2312_v3 }
  0x33   : > { %782 = vmatpush1.bf16.msra.mxu1 %v2228_v33  ;;  %1134 = vmatpush1.bf16.msra.mxu0 %v2261_v56 }
  0x34   : > { %783 = vmatprep.subr.bf16.mxu1 %v2233_v35  ;;  %1135 = vmatprep.subr.bf16.mxu0 %v2266_v57 }
  0x37   : > { %784 = vmatpush1.bf16.msra.mxu1 %v2231_v36  ;;  %1136 = vmatpush1.bf16.msra.mxu0 %v2264_v59 }
  0x38   : > { %785 = vmatprep.subr.bf16.mxu1 %v2236_v37  ;;  %1137 = vmatprep.subr.bf16.mxu0 %v2269_v60 }
  0x39   : > { %1968 = vmatmul.mubr.msk.bf16.gmra.mrb[20].mxu0 %vm372_vm1, %v2453_v34 }
  0x3b   : > { %786 = vmatpush1.bf16.msra.mxu1 %v2234_v38  ;;  %1138 = vmatpush1.bf16.msra.mxu0 %v2267_v62 }
  0x3c   : > { %787 = vmatprep.subr.bf16.mxu1 %v2239_v39 }
  0x3f   : > { %788 = vmatpush1.bf16.msra.mxu1 %v2237_v40 }
  0xe4   : > { %v444_v5 = vpop.f32.mrb[0].mxu0  ;;  %v504_v18 = vpop.f32.mrb[0].mxu1 }
  0xe5   : > { %v445_v6 = vadd.f32 %v444_v5, %v2543_v2  ;;  %v446_v7 = vpop.f32.mrb[1].mxu0  ;;  %v505_v20 = vadd.f32 %v504_v18, %v2543_v2  ;;  %v506_v21 = vpop.f32.mrb[1].mxu1 }
  0xe6   : > { %v447_v9 = vadd.f32 %v446_v7, %v2546_v4  ;;  %v448_v10 = vpop.f32.mrb[2].mxu0  ;;  %v507_v24 = vadd.f32 %v506_v21, %v2546_v4  ;;  %v508_v25 = vpop.f32.mrb[2].mxu1 }
  0xe7   : > { %v449_v11 = vadd.f32 %v448_v10, %v2543_v2  ;;  %v450_v12 = vpop.f32.mrb[3].mxu0  ;;  %v543_v14 = vmax.f32 %v445_v6, 0.0  ;;  %v567_v30 = vmax.f32 %v505_v20, 0.0  ;;  %v509_v31 = vadd.f32 %v508_v25, %v2543_v2  ;;  %v510_v32 = vpop.f32.mrb[3].mxu1 }
  0xe8   : > { %v451_v13 = vadd.f32 %v450_v12, %v2546_v4  ;;  %v544_v16 = vmax.f32 %v447_v9, 0.0  ;;  %v568_v36 = vmax.f32 %v507_v24, 0.0  ;;  %v511_v37 = vadd.f32 %v510_v32, %v2546_v4 }
  0xe9   : > { %v545_v15 = vmax.f32 %v449_v11, 0.0  ;;  %v569_v40 = vmax.f32 %v509_v31, 0.0 }
  0xea   : > { %v546_v17 = vmax.f32 %v451_v13, 0.0  ;;  %v570_v42 = vmax.f32 %v511_v37, 0.0 }
  0xeb   : > { %v583_v19 = vpack.c.bf16 %v545_v15, %v543_v14  ;;  %v2561_v45 = vpack.c.bf16 %v569_v40, %v567_v30 }
  0xec   : > { %v584_v22 = vpack.c.bf16 %v546_v17, %v544_v16  ;;  %v454_v23 = vpop.f32.mrb[4].mxu0  ;;  %v2563_v48 = vpack.c.bf16 %v570_v42, %v568_v36  ;;  %v514_v49 = vpop.f32.mrb[4].mxu1 }
  0xed   : > { %v455_v26 = vadd.f32 %v454_v23, %v2543_v2  ;;  %v456_v28 = vpop.f32.mrb[5].mxu0  ;;  %v515_v51 = vadd.f32 %v514_v49, %v2543_v2  ;;  %v516_v52 = vpop.f32.mrb[5].mxu1 }
  0xee   : > { %v457_v33 = vadd.f32 %v456_v28, %v2546_v4  ;;  %v458_v35 = vpop.f32.mrb[6].mxu0  ;;  %1997 = vmatprep.mubr.msk.bf16.mxu1 %vm734_vm2, %v584_v22  ;;  %v517_v55 = vadd.f32 %v516_v52, %v2546_v4  ;;  %v518_v56 = vpop.f32.mrb[6].mxu1 }
  0xef   : > { %v459_v38 = vadd.f32 %v458_v35, %v2543_v2  ;;  %v460_v39 = vpop.f32.mrb[7].mxu0  ;;  %798 = vmatmul.mubr.bf16.vlgmr.msra.gmra.mrb[16].mxu1 %v583_v19  ;;  %v547_v43 = vmax.f32 %v455_v26, 0.0  ;;  %v571_v59 = vmax.f32 %v515_v51, 0.0  ;;  %v519_v60 = vadd.f32 %v518_v56, %v2543_v2  ;;  %v520_v61 = vpop.f32.mrb[7].mxu1 }
  0xf0   : > { %v461_v41 = vadd.f32 %v460_v39, %v2546_v4  ;;  %v548_v46 = vmax.f32 %v457_v33, 0.0  ;;  %v572_v5 = vmax.f32 %v517_v55, 0.0  ;;  %v521_v6 = vadd.f32 %v520_v61, %v2546_v4 }
  0xf1   : > { %v549_v44 = vmax.f32 %v459_v38, 0.0  ;;  %v573_v10 = vmax.f32 %v519_v60, 0.0 }
  0xf2   : > { %v550_v47 = vmax.f32 %v461_v41, 0.0  ;;  %v574_v12 = vmax.f32 %v521_v6, 0.0 }
  0xf3   : > { %v585_v50 = vpack.c.bf16 %v549_v44, %v547_v43  ;;  %v2574_v15 = vpack.c.bf16 %v573_v10, %v571_v59 }
  0xf4   : > { %v586_v53 = vpack.c.bf16 %v550_v47, %v548_v46  ;;  %v464_v54 = vpop.f32.mrb[8].mxu0  ;;  %v2576_v18 = vpack.c.bf16 %v574_v12, %v572_v5  ;;  %v524_v19 = vpop.f32.mrb[8].mxu1 }
  0xf5   : > { %v465_v57 = vadd.f32 %v464_v54, %v2543_v2  ;;  %v466_v58 = vpop.f32.mrb[9].mxu0  ;;  %v525_v21 = vadd.f32 %v524_v19, %v2543_v2  ;;  %v526_v22 = vpop.f32.mrb[9].mxu1 }
  0xf6   : > { %v467_v62 = vadd.f32 %v466_v58, %v2546_v4  ;;  %v468_v0 = vpop.f32.mrb[10].mxu0  ;;  %1998 = vmatprep.mubr.msk.bf16.mxu1 %vm734_vm2, %v586_v53  ;;  %v527_v25 = vadd.f32 %v526_v22, %v2546_v4  ;;  %v528_v26 = vpop.f32.mrb[10].mxu1 }
  0xf7   : > { %v469_v7 = vadd.f32 %v468_v0, %v2543_v2  ;;  %v470_v9 = vpop.f32.mrb[11].mxu0  ;;  %808 = vmatmul.mubr.bf16.gmra.mrb[20].mxu1 %v585_v50  ;;  %v551_v13 = vmax.f32 %v465_v57, 0.0  ;;  %v575_v31 = vmax.f32 %v525_v21, 0.0  ;;  %v529_v32 = vadd.f32 %v528_v26, %v2543_v2  ;;  %v530_v33 = vpop.f32.mrb[11].mxu1 }
  0xf8   : > { %v471_v11 = vadd.f32 %v470_v9, %v2546_v4  ;;  %v552_v16 = vmax.f32 %v467_v62, 0.0  ;;  %v576_v37 = vmax.f32 %v527_v25, 0.0  ;;  %v531_v38 = vadd.f32 %v530_v33, %v2546_v4 }
  0xf9   : > { %v553_v14 = vmax.f32 %v469_v7, 0.0  ;;  %v577_v41 = vmax.f32 %v529_v32, 0.0 }
  0xfa   : > { %v554_v17 = vmax.f32 %v471_v11, 0.0  ;;  %v578_v43 = vmax.f32 %v531_v38, 0.0 }
  0xfb   : > { %v587_v20 = vpack.c.bf16 %v553_v14, %v551_v13  ;;  %v599_v47 = vpack.c.bf16 %v577_v41, %v575_v31 }
  0xfc   : > { %v588_v23 = vpack.c.bf16 %v554_v17, %v552_v16  ;;  %v474_v24 = vpop.f32.mrb[12].mxu0  ;;  %v600_v51 = vpack.c.bf16 %v578_v43, %v576_v37  ;;  %v534_v52 = vpop.f32.mrb[12].mxu1 }
  0xfd   : > { %v475_v28 = vadd.f32 %v474_v24, %v2543_v2  ;;  %v476_v30 = vpop.f32.mrb[13].mxu0  ;;  %v535_v54 = vadd.f32 %v534_v52, %v2543_v2  ;;  %v536_v55 = vpop.f32.mrb[13].mxu1 }
  0xfe   : > { %v477_v35 = vadd.f32 %v476_v30, %v2546_v4  ;;  %v478_v36 = vpop.f32.mrb[14].mxu0  ;;  %1999 = vmatprep.mubr.msk.bf16.mxu1 %vm734_vm2, %v588_v23  ;;  %v537_v58 = vadd.f32 %v536_v55, %v2546_v4  ;;  %v538_v59 = vpop.f32.mrb[14].mxu1 }
  0xff   : > { %v479_v39 = vadd.f32 %v478_v36, %v2543_v2  ;;  %v480_v40 = vpop.f32.mrb[15].mxu0  ;;  %818 = vmatmul.mubr.bf16.gmra.mrb[24].mxu1 %v587_v20  ;;  %v555_v44 = vmax.f32 %v475_v28, 0.0  ;;  %v579_v62 = vmax.f32 %v535_v54, 0.0  ;;  %v539_v0 = vadd.f32 %v538_v59, %v2543_v2  ;;  %v540_v5 = vpop.f32.mrb[15].mxu1 }
 0x100   : > { %v481_v42 = vadd.f32 %v480_v40, %v2546_v4  ;;  %v556_v49 = vmax.f32 %v477_v35, 0.0  ;;  %v580_v9 = vmax.f32 %v537_v58, 0.0  ;;  %v541_v10 = vadd.f32 %v540_v5, %v2546_v4 }
 0x101   : > { %v557_v46 = vmax.f32 %v479_v39, 0.0  ;;  %v581_v13 = vmax.f32 %v539_v0, 0.0 }
 0x102   : > { %v558_v50 = vmax.f32 %v481_v42, 0.0  ;;  %v582_v16 = vmax.f32 %v541_v10, 0.0 }
 0x103   : > { %v589_v53 = vpack.c.bf16 %v557_v46, %v555_v44  ;;  %v601_v20 = vpack.c.bf16 %v581_v13, %v579_v62 }
 0x104   : > { %v590_v56 = vpack.c.bf16 %v558_v50, %v556_v49  ;;  %v484_v57 = vpop.f32.mrb[16].mxu0  ;;  %v602_v23 = vpack.c.bf16 %v582_v16, %v580_v9 }
 0x105   : > { %v485_v60 = vadd.f32 %v484_v57, %v2543_v2  ;;  %v486_v61 = vpop.f32.mrb[17].mxu0 }
 0x106   : > { %v487_v6 = vadd.f32 %v486_v61, %v2546_v4  ;;  %v488_v7 = vpop.f32.mrb[18].mxu0  ;;  %2000 = vmatprep.mubr.msk.bf16.mxu1 %vm734_vm2, %v590_v56  ;;  %v2276_v61 = vld [vmem:[%s2928_s1 + $0x1a0] ss:$8 sps:$4 sm:$0xff]  }
 0x107   : > { %v489_v11 = vadd.f32 %v488_v7, %v2543_v2  ;;  %v490_v12 = vpop.f32.mrb[19].mxu0  ;;  %828 = vmatmul.mubr.bf16.gmra.mrb[28].mxu1 %v589_v53  ;;  %v559_v17 = vmax.f32 %v485_v60, 0.0 }
 0x108   : > { %v491_v14 = vadd.f32 %v490_v12, %v2546_v4  ;;  %v560_v21 = vmax.f32 %v487_v6, 0.0 }
 0x109   : > { %v561_v19 = vmax.f32 %v489_v11, 0.0  ;;  %v2277_v11 = vld [vmem:[%s2928_s1 + $0x1b0] ss:$8 sps:$4 sm:$0xff]  }
 0x10a   : > { %v562_v22 = vmax.f32 %v491_v14, 0.0 }
 0x10b   : > { %v591_v24 = vpack.c.bf16 %v561_v19, %v559_v17 }
 0x10c   : > { %v592_v25 = vpack.c.bf16 %v562_v22, %v560_v21  ;;  %v494_v26 = vpop.f32.mrb[20].mxu0  ;;  %v2278_v21 = vld [vmem:[%s2928_s1 + $0x1c0] ss:$8 sps:$4 sm:$0xff]  }
 0x10d   : > { %v495_v28 = vadd.f32 %v494_v26, %v2543_v2  ;;  %v496_v30 = vpop.f32.mrb[21].mxu0 }
 0x10e   : > { %v497_v31 = vadd.f32 %v496_v30, %v2546_v4  ;;  %v498_v32 = vpop.f32.mrb[22].mxu0  ;;  %2001 = vmatprep.mubr.msk.bf16.mxu1 %vm734_vm2, %v592_v25 }
 0x10f   : > { %v499_v33 = vadd.f32 %v498_v32, %v2543_v2  ;;  %v500_v35 = vpop.f32.mrb[23].mxu0  ;;  %838 = vmatmul.mubr.bf16.gmra.mrb[32].mxu1 %v591_v24  ;;  %v563_v37 = vmax.f32 %v495_v28, 0.0  ;;  %v2272_v2 = vld [vmem:[%s2928_s1 + $0x184] ss:$8 sps:$4 sm:$0xff]  }
 0x110   : > { %v501_v36 = vadd.f32 %v500_v35, %v2546_v4  ;;  %v564_v39 = vmax.f32 %v497_v31, 0.0  ;;  %v2270_v4 = vld [vmem:[%s2928_s1 + $0x180] ss:$8 sps:$4 sm:$0xff]   ;;  %1139 = vmatprep.subr.bf16.mxu0 %v2272_v2  ;;  %v2279_v31 = vld [vmem:[%s2928_s1 + $0x1d0] ss:$8 sps:$4 sm:$0xff]  }
 0x111   : > { %v565_v38 = vmax.f32 %v499_v33, 0.0  ;;  %1140 = vmatpush1.bf16.msra.mxu0 %v2270_v4 }
 0x112   : > { %v566_v40 = vmax.f32 %v501_v36, 0.0 }
 0x113   : > { %v593_v41 = vpack.c.bf16 %v565_v38, %v563_v37 }
 0x114   : > { %v594_v42 = vpack.c.bf16 %v566_v40, %v564_v39  ;;  %v2280_v40 = vld [vmem:[%s2928_s1 + $0x1e0] ss:$8 sps:$4 sm:$0xff]  }
 0x116   : > { %2002 = vmatprep.mubr.msk.bf16.mxu1 %vm734_vm2, %v594_v42 }
 0x117   : > { %848 = vmatmul.mubr.bf16.gmra.mrb[36].mxu1 %v593_v41 }
 0x118   : > { %2003 = vmatprep.mubr.msk.bf16.mxu1 %vm734_vm2, %v2563_v48  ;;  %v2273_v48 = vld [vmem:[%s2928_s1 + $0x190] ss:$8 sps:$4 sm:$0xff]  }
 0x11f   : > { %858 = vmatmul.mubr.bf16.gmra.mrb[40].mxu1 %v2561_v45  ;;  %v2275_v45 = vld [vmem:[%s2928_s1 + $0x194] ss:$8 sps:$4 sm:$0xff]  }
 0x120   : > { %2004 = vmatprep.mubr.msk.bf16.mxu1 %vm734_vm2, %v2576_v18  ;;  %1141 = vmatprep.subr.bf16.mxu0 %v2275_v45 }
 0x121   : > { %1142 = vmatpush1.bf16.msra.mxu0 %v2273_v48 }
 0x122   : > { %1539 = vmatprep.subr.bf16.mxu0 %v2312_v3 }
 0x127   : > { %868 = vmatmul.mubr.bf16.gmra.mrb[44].mxu1 %v2574_v15  ;;  %v1946_v15 = vld [vmem:[%s2929_s2 + $0x1] ss:$8 sm:$0x3] }
 0x128   : > { %2005 = vmatprep.mubr.msk.bf16.mxu1 %vm734_vm2, %v600_v51  ;;  %v2632_v18 = vrot.slane %v1946_v15, %v2535_v63  ;;  %v2635_v43 = vrot.slane %v1946_v15, %v2540_v1  ;;  %v2281_v15 = vld [vmem:[%s2928_s1 + $0x1f0] ss:$8 sps:$4 sm:$0xff]  }
 0x12f   : > { %878 = vmatmul.mubr.bf16.gmra.mrb[48].mxu1 %v599_v47 }
 0x130   : > { %2006 = vmatprep.mubr.msk.bf16.mxu1 %vm734_vm2, %v602_v23 }
 0x137   : > { %888 = vmatmul.mubr.bf16.gmra.mrb[52].mxu1 %v601_v20 }
 0x138   : > { %2119 = vmatprep.mubr.msk.bf16.mxu1 %vm372_vm1, %v2367_v8  ;;  %v2282_v8 = vld [vmem:[%s2928_s1 + $0x260] ss:$8 sps:$4 sm:$0xff]  }
 0x139   : > { %2115 = vmatprep.subr.bf16.mxu1 %v2282_v8 }
 0x13a   : > { %2116 = vmatpush3.bf16.msra.mxu1 %v2282_v8 }
 0x1c2   : > { %v799_v44 = vpop.f32.mrb[16].mxu1 }
 0x1c3   : > { %v800_v46 = vadd.f32 %v799_v44, %v2632_v18  ;;  %v801_v47 = vpop.f32.mrb[17].mxu1 }
 0x1c4   : > { %v802_v49 = vadd.f32 %v801_v47, %v2635_v43  ;;  %v803_v50 = vpop.f32.mrb[18].mxu1 }
 0x1c5   : > { %v804_v51 = vadd.f32 %v803_v50, %v2632_v18  ;;  %v805_v52 = vpop.f32.mrb[19].mxu1  ;;  %v898_v54 = vmax.f32 %v800_v46, 0.0 }
 0x1c6   : > { %v806_v53 = vadd.f32 %v805_v52, %v2635_v43  ;;  %v899_v56 = vmax.f32 %v802_v49, 0.0 }
 0x1c7   : > { %v900_v55 = vmax.f32 %v804_v51, 0.0 }
 0x1c8   : > { %v901_v57 = vmax.f32 %v806_v53, 0.0  ;;  %v2283_v53 = vld [vmem:[%s2928_s1 + $0x200] ss:$8 sps:$4 sm:$0xff]  }
 0x1c9   : > { %v938_v58 = vpack.c.bf16 %v900_v55, %v898_v54 }
 0x1ca   : > { %v939_v59 = vpack.c.bf16 %v901_v57, %v899_v56  ;;  %v809_v60 = vpop.f32.mrb[20].mxu1 }
 0x1cb   : > { %v810_v62 = vadd.f32 %v809_v60, %v2632_v18  ;;  %v811_v0 = vpop.f32.mrb[21].mxu1 }
 0x1cc   : > { %v812_v5 = vadd.f32 %v811_v0, %v2635_v43  ;;  %v813_v6 = vpop.f32.mrb[22].mxu1  ;;  %2031 = vmatprep.mubr.msk.bf16.mxu0 %vm734_vm2, %v939_v59 }
 0x1cd   : > { %v814_v7 = vadd.f32 %v813_v6, %v2632_v18  ;;  %v815_v9 = vpop.f32.mrb[23].mxu1  ;;  %1152 = vmatmul.mubr.bf16.vlgmr.msra.gmra.mrb[24].mxu0 %v938_v58  ;;  %v902_v12 = vmax.f32 %v810_v62, 0.0 }
 0x1ce   : > { %v816_v10 = vadd.f32 %v815_v9, %v2635_v43  ;;  %1540 = vmatpush1.bf16.msra.mxu0 %v2276_v61  ;;  %v903_v14 = vmax.f32 %v812_v5, 0.0  ;;  %v2284_v61 = vld [vmem:[%s2928_s1 + $0x210] ss:$8 sps:$4 sm:$0xff]  }
 0x1cf   : > { %v904_v13 = vmax.f32 %v814_v7, 0.0  ;;  %1541 = vmatprep.subr.bf16.mxu0 %v2312_v3 }
 0x1d0   : > { %v905_v16 = vmax.f32 %v816_v10, 0.0 }
 0x1d1   : > { %v940_v17 = vpack.c.bf16 %v904_v13, %v902_v12 }
 0x1d2   : > { %v941_v19 = vpack.c.bf16 %v905_v16, %v903_v14  ;;  %v819_v20 = vpop.f32.mrb[24].mxu1  ;;  %1542 = vmatpush1.bf16.msra.mxu0 %v2277_v11  ;;  %v2285_v11 = vld [vmem:[%s2928_s1 + $0x220] ss:$8 sps:$4 sm:$0xff]  }
 0x1d3   : > { %v820_v22 = vadd.f32 %v819_v20, %v2632_v18  ;;  %v821_v23 = vpop.f32.mrb[25].mxu1  ;;  %1543 = vmatprep.subr.bf16.mxu0 %v2312_v3 }
 0x1d4   : > { %v822_v24 = vadd.f32 %v821_v23, %v2635_v43  ;;  %v823_v25 = vpop.f32.mrb[26].mxu1  ;;  %2032 = vmatprep.mubr.msk.bf16.mxu0 %vm734_vm2, %v941_v19 }
 0x1d5   : > { %v824_v26 = vadd.f32 %v823_v25, %v2632_v18  ;;  %v825_v28 = vpop.f32.mrb[27].mxu1  ;;  %1162 = vmatmul.mubr.bf16.gmra.mrb[28].mxu0 %v940_v17  ;;  %v906_v32 = vmax.f32 %v820_v22, 0.0 }
 0x1d6   : > { %v826_v30 = vadd.f32 %v825_v28, %v2635_v43  ;;  %1544 = vmatpush1.bf16.msra.mxu0 %v2278_v21  ;;  %v907_v35 = vmax.f32 %v822_v24, 0.0  ;;  %v2286_v21 = vld [vmem:[%s2928_s1 + $0x230] ss:$8 sps:$4 sm:$0xff]  }
 0x1d7   : > { %v908_v33 = vmax.f32 %v824_v26, 0.0  ;;  %1545 = vmatprep.subr.bf16.mxu0 %v2312_v3 }
 0x1d8   : > { %v909_v36 = vmax.f32 %v826_v30, 0.0 }
 0x1d9   : > { %v942_v37 = vpack.c.bf16 %v908_v33, %v906_v32 }
 0x1da   : > { %v943_v38 = vpack.c.bf16 %v909_v36, %v907_v35  ;;  %v829_v39 = vpop.f32.mrb[28].mxu1  ;;  %1546 = vmatpush1.bf16.msra.mxu0 %v2279_v31  ;;  %v2287_v31 = vld [vmem:[%s2928_s1 + $0x240] ss:$8 sps:$4 sm:$0xff]  }
 0x1db   : > { %v830_v41 = vadd.f32 %v829_v39, %v2632_v18  ;;  %v831_v42 = vpop.f32.mrb[29].mxu1  ;;  %1547 = vmatprep.subr.bf16.mxu0 %v2312_v3 }
 0x1dc   : > { %v832_v2 = vadd.f32 %v831_v42, %v2635_v43  ;;  %v833_v4 = vpop.f32.mrb[30].mxu1  ;;  %2033 = vmatprep.mubr.msk.bf16.mxu0 %vm734_vm2, %v943_v38 }
 0x1dd   : > { %v834_v45 = vadd.f32 %v833_v4, %v2632_v18  ;;  %v835_v48 = vpop.f32.mrb[31].mxu1  ;;  %1172 = vmatmul.mubr.bf16.gmra.mrb[32].mxu0 %v942_v37  ;;  %v910_v44 = vmax.f32 %v830_v41, 0.0 }
 0x1de   : > { %v836_v8 = vadd.f32 %v835_v48, %v2635_v43  ;;  %1548 = vmatpush1.bf16.msra.mxu0 %v2280_v40  ;;  %v911_v47 = vmax.f32 %v832_v2, 0.0 }
 0x1df   : > { %v912_v46 = vmax.f32 %v834_v45, 0.0  ;;  %1549 = vmatprep.subr.bf16.mxu0 %v2312_v3 }
 0x1e0   : > { %v913_v49 = vmax.f32 %v836_v8, 0.0 }
 0x1e1   : > { %v944_v50 = vpack.c.bf16 %v912_v46, %v910_v44 }
 0x1e2   : > { %v945_v51 = vpack.c.bf16 %v913_v49, %v911_v47  ;;  %v839_v52 = vpop.f32.mrb[32].mxu1  ;;  %1550 = vmatpush1.bf16.msra.mxu0 %v2281_v15 }
 0x1e3   : > { %v840_v54 = vadd.f32 %v839_v52, %v2632_v18  ;;  %v841_v55 = vpop.f32.mrb[33].mxu1  ;;  %1551 = vmatprep.subr.bf16.mxu0 %v2312_v3 }
 0x1e4   : > { %v842_v56 = vadd.f32 %v841_v55, %v2635_v43  ;;  %v843_v57 = vpop.f32.mrb[34].mxu1  ;;  %2034 = vmatprep.mubr.msk.bf16.mxu0 %vm734_vm2, %v945_v51 }
 0x1e5   : > { %v844_v58 = vadd.f32 %v843_v57, %v2632_v18  ;;  %v845_v59 = vpop.f32.mrb[35].mxu1  ;;  %1182 = vmatmul.mubr.bf16.gmra.mrb[36].mxu0 %v944_v50  ;;  %v914_v62 = vmax.f32 %v840_v54, 0.0 }
 0x1e6   : > { %v846_v60 = vadd.f32 %v845_v59, %v2635_v43  ;;  %1552 = vmatpush1.bf16.msra.mxu0 %v2283_v53  ;;  %v915_v5 = vmax.f32 %v842_v56, 0.0 }
 0x1e7   : > { %v916_v0 = vmax.f32 %v844_v58, 0.0  ;;  %1553 = vmatprep.subr.bf16.mxu0 %v2312_v3 }
 0x1e8   : > { %v917_v6 = vmax.f32 %v846_v60, 0.0 }
 0x1e9   : > { %v946_v7 = vpack.c.bf16 %v916_v0, %v914_v62 }
 0x1ea   : > { %v947_v9 = vpack.c.bf16 %v917_v6, %v915_v5  ;;  %v849_v10 = vpop.f32.mrb[36].mxu1  ;;  %1554 = vmatpush1.bf16.msra.mxu0 %v2284_v61 }
 0x1eb   : > { %v850_v12 = vadd.f32 %v849_v10, %v2632_v18  ;;  %v851_v13 = vpop.f32.mrb[37].mxu1  ;;  %1555 = vmatprep.subr.bf16.mxu0 %v2312_v3 }
 0x1ec   : > { %v852_v14 = vadd.f32 %v851_v13, %v2635_v43  ;;  %v853_v16 = vpop.f32.mrb[38].mxu1  ;;  %2035 = vmatprep.mubr.msk.bf16.mxu0 %vm734_vm2, %v947_v9 }
 0x1ed   : > { %v854_v17 = vadd.f32 %v853_v16, %v2632_v18  ;;  %v855_v19 = vpop.f32.mrb[39].mxu1  ;;  %1192 = vmatmul.mubr.bf16.gmra.mrb[40].mxu0 %v946_v7  ;;  %v918_v22 = vmax.f32 %v850_v12, 0.0 }
 0x1ee   : > { %v856_v20 = vadd.f32 %v855_v19, %v2635_v43  ;;  %1556 = vmatpush1.bf16.msra.mxu0 %v2285_v11  ;;  %v919_v24 = vmax.f32 %v852_v14, 0.0 }
 0x1ef   : > { %v920_v23 = vmax.f32 %v854_v17, 0.0  ;;  %1557 = vmatprep.subr.bf16.mxu0 %v2312_v3 }
 0x1f0   : > { %v921_v25 = vmax.f32 %v856_v20, 0.0 }
 0x1f1   : > { %v948_v26 = vpack.c.bf16 %v920_v23, %v918_v22 }
 0x1f2   : > { %v949_v28 = vpack.c.bf16 %v921_v25, %v919_v24  ;;  %v859_v30 = vpop.f32.mrb[40].mxu1  ;;  %1558 = vmatpush1.bf16.msra.mxu0 %v2286_v21 }
 0x1f3   : > { %v860_v32 = vadd.f32 %v859_v30, %v2632_v18  ;;  %v861_v33 = vpop.f32.mrb[41].mxu1  ;;  %1559 = vmatprep.subr.bf16.mxu0 %v2312_v3 }
 0x1f4   : > { %v862_v35 = vadd.f32 %v861_v33, %v2635_v43  ;;  %v863_v36 = vpop.f32.mrb[42].mxu1  ;;  %2036 = vmatprep.mubr.msk.bf16.mxu0 %vm734_vm2, %v949_v28  ;;  %v2300_v33 = vld [vmem:[%s2364_s26 + $0x18] sm:$0xff]  }
 0x1f5   : > { %v864_v37 = vadd.f32 %v863_v36, %v2632_v18  ;;  %v865_v38 = vpop.f32.mrb[43].mxu1  ;;  %1202 = vmatmul.mubr.bf16.gmra.mrb[44].mxu0 %v948_v26  ;;  %v922_v40 = vmax.f32 %v860_v32, 0.0  ;;  %v2299_v32 = vld [vmem:[%s2364_s26 + $0x10] sm:$0xff]   ;;  %v2302_v36 = vld [vmem:[%s2364_s26 + $0x38] sm:$0xff]  }
 0x1f6   : > { %v866_v39 = vadd.f32 %v865_v38, %v2635_v43  ;;  %1560 = vmatpush1.bf16.msra.mxu0 %v2287_v31  ;;  %v923_v42 = vmax.f32 %v862_v35, 0.0  ;;  %v2298_v31 = vld [vmem:[%s2364_s26 + $0x8] sm:$0xff]   ;;  %v2301_v35 = vld [vmem:[%s2364_s26 + $0x30] sm:$0xff]  }
 0x1f7   : > { %v924_v41 = vmax.f32 %v864_v37, 0.0  ;;  %1561 = vmatprep.subr.bf16.mxu0 %v2312_v3  ;;  %v2303_v37 = vld [vmem:[%s2364_s26 + $0x40] sm:$0xff]  }
 0x1f8   : > { %v925_v2 = vmax.f32 %v866_v39, 0.0  ;;  %v2290_v38 = vld [vmem:[%s2928_s1 + $0x280] ss:$8 sps:$4 sm:$0xff]  }
 0x1f9   : > { %v950_v4 = vpack.c.bf16 %v924_v41, %v922_v40  ;;  %v1947_v39 = vld [vmem:[%s2929_s2 + $0x2] ss:$8 sm:$0x3] }
 0x1fa   : > { %v951_v45 = vpack.c.bf16 %v925_v2, %v923_v42  ;;  %v869_v48 = vpop.f32.mrb[44].mxu1  ;;  %v2773_v40 = vrot.slane %v1947_v39, %v2535_v63  ;;  %v2776_v41 = vrot.slane %v1947_v39, %v2540_v1 }
 0x1fb   : > { %v870_v8 = vadd.f32 %v869_v48, %v2632_v18  ;;  %v871_v15 = vpop.f32.mrb[45].mxu1 }
 0x1fc   : > { %v872_v44 = vadd.f32 %v871_v15, %v2635_v43  ;;  %v873_v46 = vpop.f32.mrb[46].mxu1  ;;  %2037 = vmatprep.mubr.msk.bf16.mxu0 %vm734_vm2, %v951_v45 }
 0x1fd   : > { %v874_v47 = vadd.f32 %v873_v46, %v2632_v18  ;;  %v875_v49 = vpop.f32.mrb[47].mxu1  ;;  %1212 = vmatmul.mubr.bf16.gmra.mrb[48].mxu0 %v950_v4  ;;  %v926_v3 = vmax.f32 %v870_v8, 0.0 }
 0x1fe   : > { %v876_v50 = vadd.f32 %v875_v49, %v2635_v43  ;;  %v927_v52 = vmax.f32 %v872_v44, 0.0 }
 0x1ff   : > { %v928_v51 = vmax.f32 %v874_v47, 0.0 }
 0x200   : > { %v929_v53 = vmax.f32 %v876_v50, 0.0 }
 0x201   : > { %v952_v54 = vpack.c.bf16 %v928_v51, %v926_v3 }
 0x202   : > { %v953_v55 = vpack.c.bf16 %v929_v53, %v927_v52  ;;  %v879_v56 = vpop.f32.mrb[48].mxu1 }
 0x203   : > { %v880_v57 = vadd.f32 %v879_v56, %v2632_v18  ;;  %v881_v58 = vpop.f32.mrb[49].mxu1 }
 0x204   : > { %v882_v59 = vadd.f32 %v881_v58, %v2635_v43  ;;  %v883_v60 = vpop.f32.mrb[50].mxu1  ;;  %2038 = vmatprep.mubr.msk.bf16.mxu0 %vm734_vm2, %v953_v55 }
 0x205   : > { %v884_v61 = vadd.f32 %v883_v60, %v2632_v18  ;;  %v885_v62 = vpop.f32.mrb[51].mxu1  ;;  %1222 = vmatmul.mubr.bf16.gmra.mrb[52].mxu0 %v952_v54  ;;  %v930_v5 = vmax.f32 %v880_v57, 0.0 }
 0x206   : > { %v886_v0 = vadd.f32 %v885_v62, %v2635_v43  ;;  %v931_v7 = vmax.f32 %v882_v59, 0.0 }
 0x207   : > { %v932_v6 = vmax.f32 %v884_v61, 0.0 }
 0x208   : > { %v933_v9 = vmax.f32 %v886_v0, 0.0 }
 0x209   : > { %v954_v10 = vpack.c.bf16 %v932_v6, %v930_v5 }
 0x20a   : > { %v955_v11 = vpack.c.bf16 %v933_v9, %v931_v7  ;;  %v889_v12 = vpop.f32.mrb[52].mxu1 }
 0x20b   : > { %v890_v13 = vadd.f32 %v889_v12, %v2632_v18  ;;  %v891_v14 = vpop.f32.mrb[53].mxu1 }
 0x20c   : > { %v892_v16 = vadd.f32 %v891_v14, %v2635_v43  ;;  %v893_v17 = vpop.f32.mrb[54].mxu1  ;;  %2039 = vmatprep.mubr.msk.bf16.mxu0 %vm734_vm2, %v955_v11 }
 0x20d   : > { %v894_v19 = vadd.f32 %v893_v17, %v2632_v18  ;;  %v895_v20 = vpop.f32.mrb[55].mxu1  ;;  %1232 = vmatmul.mubr.bf16.gmra.mrb[56].mxu0 %v954_v10  ;;  %v934_v22 = vmax.f32 %v890_v13, 0.0  ;;  %v2289_v18 = vld [vmem:[%s2928_s1 + $0x270] ss:$0 sps:$4 sm:$0x33]  }
 0x20e   : > { %v896_v21 = vadd.f32 %v895_v20, %v2635_v43  ;;  %v935_v24 = vmax.f32 %v892_v16, 0.0  ;;  %v2288_v43 = vld [vmem:[%s2928_s1 + $0x250] ss:$8 sps:$4 sm:$0xff]   ;;  %2179 = vmatprep.subr.msk.bf16.mxu1 %vm403_vm0, %v2289_v18  ;;  %v1322_v30 = vsel %vm403_vm0, %v2289_v18, 0 }
 0x20f   : > { %v936_v23 = vmax.f32 %v894_v19, 0.0  ;;  %2118 = vmatpush3.bf16.msra.mxu1 %v1322_v30  ;;  %1562 = vmatpush1.bf16.msra.mxu0 %v2288_v43 }
 0x210   : > { %v937_v25 = vmax.f32 %v896_v21, 0.0  ;;  %2139 = vmatprep.subr.bf16.mxu1 %v2290_v38 }
 0x211   : > { %v956_v26 = vpack.c.bf16 %v936_v23, %v934_v22 }
 0x212   : > { %v957_v28 = vpack.c.bf16 %v937_v25, %v935_v24  ;;  %2120 = vmatmul.mubr.msk.bf16.vlgmr.msra.gmra.mrb[56].mxu1 %vm372_vm1, %v2298_v31 }
 0x213   : > { %2123 = vmatprep.mubr.msk.bf16.mxu1 %vm372_vm1, %v2299_v32  ;;  %2140 = vmatpush3.bf16.msra.mxu1 %v2290_v38 }
 0x214   : > { %2040 = vmatprep.mubr.msk.bf16.mxu0 %vm734_vm2, %v957_v28 }
 0x215   : > { %1242 = vmatmul.mubr.bf16.gmra.mrb[60].mxu0 %v956_v26 }
 0x21a   : > { %2124 = vmatmul.mubr.msk.bf16.gmra.mrb[60].mxu1 %vm372_vm1, %v2300_v33 }
 0x21b   : > { %2127 = vmatprep.mubr.msk.bf16.mxu1 %vm372_vm1, %v2433_v29  ;;  %v2291_v29 = vld [vmem:[%s2928_s1 + $0x290] ss:$8 sps:$4 sm:$0xff]  }
 0x21c   : > { %2141 = vmatprep.subr.bf16.mxu1 %v2291_v29 }
 0x21d   : > { %2142 = vmatpush3.bf16.msra.mxu1 %v2291_v29 }
 0x222   : > { %2128 = vmatmul.mubr.msk.bf16.gmra.mrb[64].mxu1 %vm372_vm1, %v2453_v34  ;;  %v2292_v34 = vld [vmem:[%s2928_s1 + $0x2a0] ss:$8 sps:$4 sm:$0xff]  }
 0x223   : > { %2131 = vmatprep.mubr.msk.bf16.mxu1 %vm372_vm1, %v2301_v35  ;;  %2143 = vmatprep.subr.bf16.mxu1 %v2292_v34 }
 0x224   : > { %2144 = vmatpush3.bf16.msra.mxu1 %v2292_v34 }
 0x22a   : > { %2132 = vmatmul.mubr.msk.bf16.gmra.mrb[68].mxu1 %vm372_vm1, %v2302_v36 }
 0x22b   : > { %2135 = vmatprep.mubr.msk.bf16.mxu1 %vm372_vm1, %v2303_v37 }
 0x232   : > { %2136 = vmatmul.mubr.msk.bf16.gmra.mrb[72].mxu1 %vm372_vm1, %v2426_v27  ;;  %v2293_v27 = vld [vmem:[%s2928_s1 + $0x2b0] ss:$8 sps:$4 sm:$0xff]  }
 0x233   : > { %2145 = vmatprep.subr.bf16.mxu1 %v2293_v27 }
 0x234   : > { %2146 = vmatpush3.bf16.msra.mxu1 %v2293_v27 }
 0x2a0   : > { %v1153_v42 = vpop.f32.mrb[24].mxu0 }
 0x2a1   : > { %v1154_v2 = vadd.f32 %v1153_v42, %v2773_v40  ;;  %v1155_v4 = vpop.f32.mrb[25].mxu0 }
 0x2a2   : > { %v1156_v45 = vadd.f32 %v1155_v4, %v2776_v41  ;;  %v1157_v48 = vpop.f32.mrb[26].mxu0 }
 0x2a3   : > { %v1158_v8 = vadd.f32 %v1157_v48, %v2773_v40  ;;  %v1159_v15 = vpop.f32.mrb[27].mxu0  ;;  %v1252_v46 = vmax.f32 %v1154_v2, 0.0 }
 0x2a4   : > { %v1160_v44 = vadd.f32 %v1159_v15, %v2776_v41  ;;  %v1253_v49 = vmax.f32 %v1156_v45, 0.0 }
 0x2a5   : > { %v1254_v47 = vmax.f32 %v1158_v8, 0.0 }
 0x2a6   : > { %v1255_v63 = vmax.f32 %v1160_v44, 0.0 }
 0x2a7   : > { %v1292_v50 = vpack.c.bf16 %v1254_v47, %v1252_v46 }
 0x2a8   : > { %v1293_v3 = vpack.c.bf16 %v1255_v63, %v1253_v49  ;;  %v1163_v1 = vpop.f32.mrb[28].mxu0 }
 0x2a9   : > { %v1164_v51 = vadd.f32 %v1163_v1, %v2773_v40  ;;  %v1165_v52 = vpop.f32.mrb[29].mxu0 }
 0x2aa   : > { %v1166_v53 = vadd.f32 %v1165_v52, %v2776_v41  ;;  %v1167_v54 = vpop.f32.mrb[30].mxu0  ;;  %2065 = vmatprep.mubr.msk.bf16.mxu0 %vm734_vm2, %v1293_v3 }
 0x2ab   : > { %v1168_v55 = vadd.f32 %v1167_v54, %v2773_v40  ;;  %v1169_v56 = vpop.f32.mrb[31].mxu0  ;;  %1572 = vmatmul.mubr.bf16.vlgmr.msra.gmra.mrb[64].mxu0 %v1292_v50  ;;  %v1256_v58 = vmax.f32 %v1164_v51, 0.0 }
 0x2ac   : > { %v1170_v57 = vadd.f32 %v1169_v56, %v2776_v41  ;;  %v1257_v60 = vmax.f32 %v1166_v53, 0.0 }
 0x2ad   : > { %v1258_v59 = vmax.f32 %v1168_v55, 0.0 }
 0x2ae   : > { %v1259_v61 = vmax.f32 %v1170_v57, 0.0 }
 0x2af   : > { %v1294_v62 = vpack.c.bf16 %v1258_v59, %v1256_v58 }
 0x2b0   : > { %v1295_v0 = vpack.c.bf16 %v1259_v61, %v1257_v60  ;;  %v1173_v5 = vpop.f32.mrb[32].mxu0 }
 0x2b1   : > { %v1174_v6 = vadd.f32 %v1173_v5, %v2773_v40  ;;  %v1175_v7 = vpop.f32.mrb[33].mxu0 }
 0x2b2   : > { %v1176_v9 = vadd.f32 %v1175_v7, %v2776_v41  ;;  %v1177_v10 = vpop.f32.mrb[34].mxu0  ;;  %2066 = vmatprep.mubr.msk.bf16.mxu0 %vm734_vm2, %v1295_v0 }
 0x2b3   : > { %v1178_v11 = vadd.f32 %v1177_v10, %v2773_v40  ;;  %v1179_v12 = vpop.f32.mrb[35].mxu0  ;;  %1580 = vmatmul.mubr.bf16.gmra.mrb[68].mxu0 %v1294_v62  ;;  %v1260_v14 = vmax.f32 %v1174_v6, 0.0 }
 0x2b4   : > { %v1180_v13 = vadd.f32 %v1179_v12, %v2776_v41  ;;  %v1261_v17 = vmax.f32 %v1176_v9, 0.0 }
 0x2b5   : > { %v1262_v16 = vmax.f32 %v1178_v11, 0.0 }
 0x2b6   : > { %v1263_v19 = vmax.f32 %v1180_v13, 0.0 }
 0x2b7   : > { %v1296_v20 = vpack.c.bf16 %v1262_v16, %v1260_v14 }
 0x2b8   : > { %v1297_v21 = vpack.c.bf16 %v1263_v19, %v1261_v17  ;;  %v1183_v22 = vpop.f32.mrb[36].mxu0 }
 0x2b9   : > { %v1184_v23 = vadd.f32 %v1183_v22, %v2773_v40  ;;  %v1185_v24 = vpop.f32.mrb[37].mxu0 }
 0x2ba   : > { %v1186_v25 = vadd.f32 %v1185_v24, %v2776_v41  ;;  %v1187_v26 = vpop.f32.mrb[38].mxu0  ;;  %2067 = vmatprep.mubr.msk.bf16.mxu0 %vm734_vm2, %v1297_v21 }
 0x2bb   : > { %v1188_v28 = vadd.f32 %v1187_v26, %v2773_v40  ;;  %v1189_v18 = vpop.f32.mrb[39].mxu0  ;;  %1588 = vmatmul.mubr.bf16.gmra.mrb[72].mxu0 %v1296_v20  ;;  %v1264_v30 = vmax.f32 %v1184_v23, 0.0 }
 0x2bc   : > { %v1190_v43 = vadd.f32 %v1189_v18, %v2776_v41  ;;  %v1265_v32 = vmax.f32 %v1186_v25, 0.0 }
 0x2bd   : > { %v1266_v31 = vmax.f32 %v1188_v28, 0.0 }
 0x2be   : > { %v1267_v33 = vmax.f32 %v1190_v43, 0.0 }
 0x2bf   : > { %v1298_v35 = vpack.c.bf16 %v1266_v31, %v1264_v30 }
 0x2c0   : > { %v1299_v36 = vpack.c.bf16 %v1267_v33, %v1265_v32  ;;  %v1193_v37 = vpop.f32.mrb[40].mxu0 }
 0x2c1   : > { %v1194_v38 = vadd.f32 %v1193_v37, %v2773_v40  ;;  %v1195_v29 = vpop.f32.mrb[41].mxu0 }
 0x2c2   : > { %v1196_v34 = vadd.f32 %v1195_v29, %v2776_v41  ;;  %v1197_v27 = vpop.f32.mrb[42].mxu0  ;;  %2068 = vmatprep.mubr.msk.bf16.mxu0 %vm734_vm2, %v1299_v36 }
 0x2c3   : > { %v1198_v39 = vadd.f32 %v1197_v27, %v2773_v40  ;;  %v1199_v42 = vpop.f32.mrb[43].mxu0  ;;  %1596 = vmatmul.mubr.bf16.gmra.mrb[76].mxu0 %v1298_v35  ;;  %v1268_v4 = vmax.f32 %v1194_v38, 0.0 }
 0x2c4   : > { %v1200_v2 = vadd.f32 %v1199_v42, %v2776_v41  ;;  %v1269_v48 = vmax.f32 %v1196_v34, 0.0 }
 0x2c5   : > { %v1270_v45 = vmax.f32 %v1198_v39, 0.0 }
 0x2c6   : > { %v1271_v8 = vmax.f32 %v1200_v2, 0.0 }
 0x2c7   : > { %v1300_v15 = vpack.c.bf16 %v1270_v45, %v1268_v4 }
 0x2c8   : > { %v1301_v44 = vpack.c.bf16 %v1271_v8, %v1269_v48  ;;  %v1203_v46 = vpop.f32.mrb[44].mxu0 }
 0x2c9   : > { %v1204_v47 = vadd.f32 %v1203_v46, %v2773_v40  ;;  %v1205_v49 = vpop.f32.mrb[45].mxu0 }
 0x2ca   : > { %v1206_v63 = vadd.f32 %v1205_v49, %v2776_v41  ;;  %v1207_v50 = vpop.f32.mrb[46].mxu0  ;;  %2069 = vmatprep.mubr.msk.bf16.mxu0 %vm734_vm2, %v1301_v44 }
 0x2cb   : > { %v1208_v3 = vadd.f32 %v1207_v50, %v2773_v40  ;;  %v1209_v1 = vpop.f32.mrb[47].mxu0  ;;  %1604 = vmatmul.mubr.bf16.gmra.mrb[80].mxu0 %v1300_v15  ;;  %v1272_v52 = vmax.f32 %v1204_v47, 0.0 }
 0x2cc   : > { %v1210_v51 = vadd.f32 %v1209_v1, %v2776_v41  ;;  %v1273_v54 = vmax.f32 %v1206_v63, 0.0 }
 0x2cd   : > { %v1274_v53 = vmax.f32 %v1208_v3, 0.0 }
 0x2ce   : > { %v1275_v55 = vmax.f32 %v1210_v51, 0.0 }
 0x2cf   : > { %v1302_v56 = vpack.c.bf16 %v1274_v53, %v1272_v52 }
 0x2d0   : > { %v1303_v57 = vpack.c.bf16 %v1275_v55, %v1273_v54  ;;  %v1213_v58 = vpop.f32.mrb[48].mxu0 }
 0x2d1   : > { %v1214_v59 = vadd.f32 %v1213_v58, %v2773_v40  ;;  %v1215_v60 = vpop.f32.mrb[49].mxu0 }
 0x2d2   : > { %v1216_v61 = vadd.f32 %v1215_v60, %v2776_v41  ;;  %v1217_v62 = vpop.f32.mrb[50].mxu0  ;;  %2070 = vmatprep.mubr.msk.bf16.mxu0 %vm734_vm2, %v1303_v57  ;;  %v2297_v57 = vld [vmem:[%s2928_s1 + $0x2f0] ss:$8 sps:$4 sm:$0xff]  }
 0x2d3   : > { %v1218_v0 = vadd.f32 %v1217_v62, %v2773_v40  ;;  %v1219_v5 = vpop.f32.mrb[51].mxu0  ;;  %1612 = vmatmul.mubr.bf16.gmra.mrb[84].mxu0 %v1302_v56  ;;  %v1276_v7 = vmax.f32 %v1214_v59, 0.0  ;;  %v2296_v56 = vld [vmem:[%s2928_s1 + $0x2e0] ss:$8 sps:$4 sm:$0xff]  }
 0x2d4   : > { %v1220_v6 = vadd.f32 %v1219_v5, %v2776_v41  ;;  %v1277_v10 = vmax.f32 %v1216_v61, 0.0 }
 0x2d5   : > { %v1278_v9 = vmax.f32 %v1218_v0, 0.0 }
 0x2d6   : > { %v1279_v11 = vmax.f32 %v1220_v6, 0.0 }
 0x2d7   : > { %v1304_v12 = vpack.c.bf16 %v1278_v9, %v1276_v7 }
 0x2d8   : > { %v1305_v13 = vpack.c.bf16 %v1279_v11, %v1277_v10  ;;  %v1223_v14 = vpop.f32.mrb[52].mxu0 }
 0x2d9   : > { %v1224_v16 = vadd.f32 %v1223_v14, %v2773_v40  ;;  %v1225_v17 = vpop.f32.mrb[53].mxu0 }
 0x2da   : > { %v1226_v19 = vadd.f32 %v1225_v17, %v2776_v41  ;;  %v1227_v20 = vpop.f32.mrb[54].mxu0  ;;  %2071 = vmatprep.mubr.msk.bf16.mxu0 %vm734_vm2, %v1305_v13  ;;  %v2863_v17 = vld [vmem:[%s2929_s2 + $0x3] ss:$0 sm:$0xff] }
 0x2db   : > { %v1228_v21 = vadd.f32 %v1227_v20, %v2773_v40  ;;  %v1229_v22 = vpop.f32.mrb[55].mxu0  ;;  %1620 = vmatmul.mubr.bf16.gmra.mrb[88].mxu0 %v1304_v12  ;;  %v1280_v24 = vmax.f32 %v1224_v16, 0.0 }
 0x2dc   : > { %v1230_v23 = vadd.f32 %v1229_v22, %v2776_v41  ;;  %v1281_v26 = vmax.f32 %v1226_v19, 0.0 }
 0x2dd   : > { %v1282_v25 = vmax.f32 %v1228_v21, 0.0 }
 0x2de   : > { %v1283_v28 = vmax.f32 %v1230_v23, 0.0 }
 0x2df   : > { %v1306_v18 = vpack.c.bf16 %v1282_v25, %v1280_v24 }
 0x2e0   : > { %v1307_v43 = vpack.c.bf16 %v1283_v28, %v1281_v26  ;;  %v1233_v30 = vpop.f32.mrb[56].mxu0 }
 0x2e1   : > { %v1234_v31 = vadd.f32 %v1233_v30, %v2773_v40  ;;  %v1235_v32 = vpop.f32.mrb[57].mxu0 }
 0x2e2   : > { %v1236_v33 = vadd.f32 %v1235_v32, %v2776_v41  ;;  %v1237_v35 = vpop.f32.mrb[58].mxu0  ;;  %2072 = vmatprep.mubr.msk.bf16.mxu0 %vm734_vm2, %v1307_v43 }
 0x2e3   : > { %v1238_v36 = vadd.f32 %v1237_v35, %v2773_v40  ;;  %v1239_v37 = vpop.f32.mrb[59].mxu0  ;;  %1628 = vmatmul.mubr.bf16.gmra.mrb[92].mxu0 %v1306_v18  ;;  %v1284_v29 = vmax.f32 %v1234_v31, 0.0 }
 0x2e4   : > { %v1240_v38 = vadd.f32 %v1239_v37, %v2776_v41  ;;  %v1285_v27 = vmax.f32 %v1236_v33, 0.0 }
 0x2e5   : > { %v1286_v34 = vmax.f32 %v1238_v36, 0.0  ;;  %v2121_v52 = vpop.f32.mrb[56].mxu1 }
 0x2e6   : > { %v1287_v39 = vmax.f32 %v1240_v38, 0.0  ;;  %v1358_v53 = vpop.f32.mrb[57].mxu1 }
 0x2e7   : > { %v1308_v42 = vpack.c.bf16 %v1286_v34, %v1284_v29  ;;  %v2122_v54 = vpop.f32.mrb[58].mxu1 }
 0x2e8   : > { %v1309_v2 = vpack.c.bf16 %v1287_v39, %v1285_v27  ;;  %v1243_v4 = vpop.f32.mrb[60].mxu0  ;;  %v1361_v55 = vpop.f32.mrb[59].mxu1 }
 0x2e9   : > { %v1244_v45 = vadd.f32 %v1243_v4, %v2773_v40  ;;  %v1245_v48 = vpop.f32.mrb[61].mxu0 }
 0x2ea   : > { %v1246_v8 = vadd.f32 %v1245_v48, %v2776_v41  ;;  %v1247_v15 = vpop.f32.mrb[62].mxu0  ;;  %2073 = vmatprep.mubr.msk.bf16.mxu0 %vm734_vm2, %v1309_v2 }
 0x2eb   : > { %v1248_v44 = vadd.f32 %v1247_v15, %v2773_v40  ;;  %v1249_v46 = vpop.f32.mrb[63].mxu0  ;;  %1636 = vmatmul.mubr.bf16.gmra.mrb[96].mxu0 %v1308_v42  ;;  %v1288_v49 = vmax.f32 %v1244_v45, 0.0  ;;  %v2294_v40 = vld [vmem:[%s2928_s1 + $0x2c0] ss:$8 sps:$4 sm:$0xff]  }
 0x2ec   : > { %v1250_v47 = vadd.f32 %v1249_v46, %v2776_v41  ;;  %v1289_v50 = vmax.f32 %v1246_v8, 0.0  ;;  %2147 = vmatprep.subr.bf16.mxu1 %v2294_v40  ;;  %v2295_v41 = vld [vmem:[%s2928_s1 + $0x2d0] ss:$8 sps:$4 sm:$0xff]  }
 0x2ed   : > { %v1290_v63 = vmax.f32 %v1248_v44, 0.0  ;;  %2148 = vmatpush3.bf16.msra.mxu1 %v2294_v40  ;;  %v2125_v58 = vpop.f32.mrb[60].mxu1 }
 0x2ee   : > { %v1291_v3 = vmax.f32 %v1250_v47, 0.0  ;;  %2149 = vmatprep.subr.bf16.mxu1 %v2295_v41  ;;  %v1374_v59 = vpop.f32.mrb[61].mxu1 }
 0x2ef   : > { %v1310_v1 = vpack.c.bf16 %v1290_v63, %v1288_v49  ;;  %v2126_v60 = vpop.f32.mrb[62].mxu1 }
 0x2f0   : > { %v1311_v51 = vpack.c.bf16 %v1291_v3, %v1289_v50  ;;  %v1377_v61 = vpop.f32.mrb[63].mxu1 }
 0x2f1   : > { %2150 = vmatpush3.bf16.msra.mxu1 %v2295_v41 }
 0x2f2   : > { %2074 = vmatprep.mubr.msk.bf16.mxu0 %vm734_vm2, %v1311_v51  ;;  %2151 = vmatprep.subr.bf16.mxu1 %v2296_v56 }
 0x2f3   : > { %1644 = vmatmul.mubr.bf16.gmra.mrb[100].mxu0 %v1310_v1 }
 0x2f5   : > { %2152 = vmatpush3.bf16.msra.mxu1 %v2296_v56  ;;  %v2840_v62 = vpop.f32.mrb[64].mxu1 }
 0x2f6   : > { %2153 = vmatprep.subr.bf16.mxu1 %v2297_v57  ;;  %v1390_v0 = vpop.f32.mrb[65].mxu1 }
 0x2f7   : > { %v2842_v5 = vpop.f32.mrb[66].mxu1 }
 0x2f8   : > { %v1393_v6 = vpop.f32.mrb[67].mxu1 }
 0x2f9   : > { %2154 = vmatpush3.bf16.msra.mxu1 %v2297_v57 }
 0x2fd   : > { %v2844_v7 = vpop.f32.mrb[68].mxu1 }
 0x2fe   : > { %v2846_v9 = vpop.f32.mrb[69].mxu1 }
 0x2ff   : > { %v2848_v10 = vpop.f32.mrb[70].mxu1 }
 0x300   : > { %v2850_v11 = vpop.f32.mrb[71].mxu1 }
 0x305   : > { %v2852_v12 = vpop.f32.mrb[72].mxu1 }
 0x306   : > { %v2854_v13 = vpop.f32.mrb[73].mxu1 }
 0x307   : > { %v2856_v14 = vpop.f32.mrb[74].mxu1 }
 0x308   : > { %v2858_v16 = vpop.f32.mrb[75].mxu1 }
 0x37e   : > { %v1573_v19 = vpop.f32.mrb[64].mxu0 }
 0x37f   : > { %v1574_v20 = vadd.f32 %v1573_v19, %v1358_v53  ;;  %v1575_v21 = vpop.f32.mrb[65].mxu0 }
 0x380   : > { %v1576_v22 = vpop.f32.mrb[66].mxu0 }
 0x381   : > { %v1652_v23 = vadd.f32 %v1574_v20, %v2863_v17  ;;  %v1577_v24 = vadd.f32 %v1576_v22, %v1361_v55  ;;  %v1578_v25 = vpop.f32.mrb[67].mxu0 }
 0x383   : > { %v1653_v26 = vadd.f32 %v1577_v24, %v2863_v17  ;;  %v1672_v28 = vmax.f32 %v1652_v23, 0.0 }
 0x385   : > { %v1673_v18 = vmax.f32 %v1653_v26, 0.0 }
 0x386   : > { %v1581_v43 = vpop.f32.mrb[68].mxu0 }
 0x387   : > { %v1582_v30 = vadd.f32 %v2121_v52, %v1581_v43  ;;  %v1583_v31 = vpop.f32.mrb[69].mxu0  ;;  %v1692_v32 = vpack.c.bf16 %v1673_v18, %v1672_v28 }
 0x388   : > { %v1584_v33 = vpop.f32.mrb[70].mxu0 }
 0x389   : > { %v1654_v35 = vadd.f32 %v1582_v30, %v2863_v17  ;;  %v1585_v36 = vadd.f32 %v2122_v54, %v1584_v33  ;;  %v1586_v37 = vpop.f32.mrb[71].mxu0  ;;  %2155 = vmatprep.mubr.bf16.mxu1 %v1692_v32 }
 0x38b   : > { %v1655_v38 = vadd.f32 %v1585_v36, %v2863_v17  ;;  %v1674_v29 = vmax.f32 %v1654_v35, 0.0 }
 0x38d   : > { %v1675_v34 = vmax.f32 %v1655_v38, 0.0 }
 0x38e   : > { %v1589_v27 = vpop.f32.mrb[72].mxu0 }
 0x38f   : > { %v1693_v39 = vpack.c.bf16 %v1675_v34, %v1674_v29  ;;  %v1590_v42 = vadd.f32 %v1589_v27, %v1374_v59  ;;  %v1591_v2 = vpop.f32.mrb[73].mxu0 }
 0x390   : > { %v1592_v4 = vpop.f32.mrb[74].mxu0 }
 0x391   : > { %v1656_v45 = vadd.f32 %v1590_v42, %v2863_v17  ;;  %v1593_v48 = vadd.f32 %v1592_v4, %v1377_v61  ;;  %v1594_v8 = vpop.f32.mrb[75].mxu0  ;;  %2156 = vmatmul.mubr.bf16.vlgmr.msra.gmra.mrb[76].mxu1 %v1693_v39 }
 0x393   : > { %v1657_v15 = vadd.f32 %v1593_v48, %v2863_v17  ;;  %v1676_v44 = vmax.f32 %v1656_v45, 0.0 }
 0x395   : > { %v1677_v46 = vmax.f32 %v1657_v15, 0.0 }
 0x396   : > { %v1597_v47 = vpop.f32.mrb[76].mxu0 }
 0x397   : > { %v1598_v49 = vadd.f32 %v2125_v58, %v1597_v47  ;;  %v1599_v63 = vpop.f32.mrb[77].mxu0  ;;  %v1694_v50 = vpack.c.bf16 %v1677_v46, %v1676_v44 }
 0x398   : > { %v1600_v3 = vpop.f32.mrb[78].mxu0 }
 0x399   : > { %v1658_v1 = vadd.f32 %v1598_v49, %v2863_v17  ;;  %v1601_v51 = vadd.f32 %v2126_v60, %v1600_v3  ;;  %v1602_v52 = vpop.f32.mrb[79].mxu0  ;;  %2159 = vmatprep.mubr.bf16.mxu1 %v1694_v50 }
 0x39b   : > { %v1659_v53 = vadd.f32 %v1601_v51, %v2863_v17  ;;  %v1678_v54 = vmax.f32 %v1658_v1, 0.0 }
 0x39d   : > { %v1679_v40 = vmax.f32 %v1659_v53, 0.0 }
 0x39e   : > { %v1605_v55 = vpop.f32.mrb[80].mxu0 }
 0x39f   : > { %v1606_v41 = vadd.f32 %v1605_v55, %v1390_v0  ;;  %v1607_v56 = vpop.f32.mrb[81].mxu0  ;;  %v1695_v57 = vpack.c.bf16 %v1679_v40, %v1678_v54 }
 0x3a0   : > { %v1608_v59 = vpop.f32.mrb[82].mxu0 }
 0x3a1   : > { %v1660_v61 = vadd.f32 %v1606_v41, %v2863_v17  ;;  %v1609_v58 = vadd.f32 %v1608_v59, %v1393_v6  ;;  %v1610_v19 = vpop.f32.mrb[83].mxu0  ;;  %2160 = vmatmul.mubr.bf16.gmra.mrb[80].mxu1 %v1695_v57 }
 0x3a3   : > { %v1661_v20 = vadd.f32 %v1609_v58, %v2863_v17  ;;  %v1680_v21 = vmax.f32 %v1660_v61, 0.0 }
 0x3a5   : > { %v1681_v60 = vmax.f32 %v1661_v20, 0.0 }
 0x3a6   : > { %v1613_v22 = vpop.f32.mrb[84].mxu0 }
 0x3a7   : > { %v1614_v23 = vadd.f32 %v2840_v62, %v1613_v22  ;;  %v1615_v24 = vpop.f32.mrb[85].mxu0  ;;  %v1696_v25 = vpack.c.bf16 %v1681_v60, %v1680_v21 }
 0x3a8   : > { %v1616_v26 = vpop.f32.mrb[86].mxu0 }
 0x3a9   : > { %v1662_v0 = vadd.f32 %v1614_v23, %v2863_v17  ;;  %v1617_v28 = vadd.f32 %v2842_v5, %v1616_v26  ;;  %v1618_v18 = vpop.f32.mrb[87].mxu0  ;;  %2163 = vmatprep.mubr.bf16.mxu1 %v1696_v25 }
 0x3ab   : > { %v1663_v6 = vadd.f32 %v1617_v28, %v2863_v17  ;;  %v1682_v43 = vmax.f32 %v1662_v0, 0.0 }
 0x3ad   : > { %v1683_v30 = vmax.f32 %v1663_v6, 0.0 }
 0x3ae   : > { %v1621_v31 = vpop.f32.mrb[88].mxu0 }
 0x3af   : > { %v1622_v32 = vadd.f32 %v1621_v31, %v2846_v9  ;;  %v1623_v33 = vpop.f32.mrb[89].mxu0  ;;  %v1697_v35 = vpack.c.bf16 %v1683_v30, %v1682_v43 }
 0x3b0   : > { %v1624_v36 = vpop.f32.mrb[90].mxu0 }
 0x3b1   : > { %v1664_v62 = vadd.f32 %v1622_v32, %v2863_v17  ;;  %v1625_v37 = vadd.f32 %v1624_v36, %v2850_v11  ;;  %v1626_v38 = vpop.f32.mrb[91].mxu0  ;;  %2164 = vmatmul.mubr.bf16.gmra.mrb[84].mxu1 %v1697_v35 }
 0x3b3   : > { %v1665_v5 = vadd.f32 %v1625_v37, %v2863_v17  ;;  %v1684_v29 = vmax.f32 %v1664_v62, 0.0 }
 0x3b5   : > { %v1685_v34 = vmax.f32 %v1665_v5, 0.0 }
 0x3b6   : > { %v1629_v27 = vpop.f32.mrb[92].mxu0 }
 0x3b7   : > { %v1630_v39 = vadd.f32 %v2844_v7, %v1629_v27  ;;  %v1631_v42 = vpop.f32.mrb[93].mxu0  ;;  %v1698_v2 = vpack.c.bf16 %v1685_v34, %v1684_v29 }
 0x3b8   : > { %v1632_v4 = vpop.f32.mrb[94].mxu0 }
 0x3b9   : > { %v1666_v9 = vadd.f32 %v1630_v39, %v2863_v17  ;;  %v1633_v45 = vadd.f32 %v2848_v10, %v1632_v4  ;;  %v1634_v48 = vpop.f32.mrb[95].mxu0  ;;  %2167 = vmatprep.mubr.bf16.mxu1 %v1698_v2 }
 0x3bb   : > { %v1667_v11 = vadd.f32 %v1633_v45, %v2863_v17  ;;  %v1686_v8 = vmax.f32 %v1666_v9, 0.0 }
 0x3bd   : > { %v1687_v15 = vmax.f32 %v1667_v11, 0.0 }
 0x3be   : > { %v1637_v44 = vpop.f32.mrb[96].mxu0 }
 0x3bf   : > { %v1638_v46 = vadd.f32 %v1637_v44, %v2854_v13  ;;  %v1639_v47 = vpop.f32.mrb[97].mxu0  ;;  %v1699_v49 = vpack.c.bf16 %v1687_v15, %v1686_v8 }
 0x3c0   : > { %v1640_v63 = vpop.f32.mrb[98].mxu0 }
 0x3c1   : > { %v1668_v7 = vadd.f32 %v1638_v46, %v2863_v17  ;;  %v1641_v50 = vadd.f32 %v1640_v63, %v2858_v16  ;;  %v1642_v3 = vpop.f32.mrb[99].mxu0  ;;  %2168 = vmatmul.mubr.bf16.gmra.mrb[88].mxu1 %v1699_v49 }
 0x3c3   : > { %v1669_v10 = vadd.f32 %v1641_v50, %v2863_v17  ;;  %v1688_v1 = vmax.f32 %v1668_v7, 0.0 }
 0x3c5   : > { %v1689_v51 = vmax.f32 %v1669_v10, 0.0 }
 0x3c6   : > { %v1645_v52 = vpop.f32.mrb[100].mxu0 }
 0x3c7   : > { %v1646_v53 = vadd.f32 %v2852_v12, %v1645_v52  ;;  %v1647_v54 = vpop.f32.mrb[101].mxu0  ;;  %v1700_v40 = vpack.c.bf16 %v1689_v51, %v1688_v1  ;;  %v295_v12 = vld [vmem:[%s2929_s2 + $0x4] ss:$0 sm:$0xff] }
 0x3c8   : > { %v1648_v13 = vpop.f32.mrb[102].mxu0 }
 0x3c9   : > { %v1670_v55 = vadd.f32 %v1646_v53, %v2863_v17  ;;  %v1649_v41 = vadd.f32 %v2856_v14, %v1648_v13  ;;  %v1650_v56 = vpop.f32.mrb[103].mxu0  ;;  %2171 = vmatprep.mubr.bf16.mxu1 %v1700_v40 }
 0x3cb   : > { %v1671_v16 = vadd.f32 %v1649_v41, %v2863_v17  ;;  %v1690_v57 = vmax.f32 %v1670_v55, 0.0 }
 0x3cd   : > { %v1691_v59 = vmax.f32 %v1671_v16, 0.0 }
 0x3cf   : > { %v1701_v61 = vpack.c.bf16 %v1691_v59, %v1690_v57 }
 0x3d1   : > { %2172 = vmatmul.mubr.bf16.gmra.mrb[92].mxu1 %v1701_v61 }
 0x464   : > { %v2157_v14 = vpop.f32.mrb[76].mxu1 }
 0x465   : > { %v1793_v17 = vadd.f32 %v2157_v14, %v295_v12  ;;  %v1784_v58 = vpop.f32.mrb[77].mxu1 }
 0x466   : > { %v1785_v19 = vadd.f32 %v1784_v58, %v295_v12  ;;  %v2158_v20 = vpop.f32.mrb[78].mxu1 }
 0x467   : > { %1865 = vst [vmem:[%s2902_s6 + $0x10] sm:$0xff] %v1793_v17  ;;  %v1796_v21 = vadd.f32 %v2158_v20, %v295_v12  ;;  %v1787_v60 = vpop.f32.mrb[79].mxu1 }
 0x468   : > { %1863 = vst [vmem:[%s2902_s6] sm:$0xff] %v1785_v19  ;;  %v1788_v22 = vadd.f32 %v1787_v60, %v295_v12 }
 0x469   : > { %1866 = vst [vmem:[%s2902_s6 + $0x18] sm:$0xff] %v1796_v21 }
 0x46a   : > { %1864 = vst [vmem:[%s2902_s6 + $0x8] sm:$0xff] %v1788_v22 }
 0x474   : > { %v2161_v23 = vpop.f32.mrb[80].mxu1 }
 0x475   : > { %v1809_v24 = vadd.f32 %v2161_v23, %v295_v12  ;;  %v1800_v25 = vpop.f32.mrb[81].mxu1 }
 0x476   : > { %v1801_v26 = vadd.f32 %v1800_v25, %v295_v12  ;;  %v2162_v0 = vpop.f32.mrb[82].mxu1 }
 0x477   : > { %1869 = vst [vmem:[%s2902_s6 + $0x30] sm:$0xff] %v1809_v24  ;;  %v1812_v28 = vadd.f32 %v2162_v0, %v295_v12  ;;  %v1803_v18 = vpop.f32.mrb[83].mxu1 }
 0x478   : > { %1867 = vst [vmem:[%s2902_s6 + $0x20] sm:$0xff] %v1801_v26  ;;  %v1804_v6 = vadd.f32 %v1803_v18, %v295_v12 }
 0x479   : > { %1870 = vst [vmem:[%s2902_s6 + $0x38] sm:$0xff] %v1812_v28 }
 0x47a   : > { %1868 = vst [vmem:[%s2902_s6 + $0x28] sm:$0xff] %v1804_v6 }
 0x484   : > { %v2165_v43 = vpop.f32.mrb[84].mxu1 }
 0x485   : > { %v1825_v30 = vadd.f32 %v2165_v43, %v295_v12  ;;  %v1816_v31 = vpop.f32.mrb[85].mxu1 }
 0x486   : > { %v1817_v32 = vadd.f32 %v1816_v31, %v295_v12  ;;  %v2166_v33 = vpop.f32.mrb[86].mxu1 }
 0x487   : > { %1873 = vst [vmem:[%s2902_s6 + $0x50] sm:$0xff] %v1825_v30  ;;  %v1828_v35 = vadd.f32 %v2166_v33, %v295_v12  ;;  %v1819_v36 = vpop.f32.mrb[87].mxu1 }
 0x488   : > { %1871 = vst [vmem:[%s2902_s6 + $0x40] sm:$0xff] %v1817_v32  ;;  %v1820_v62 = vadd.f32 %v1819_v36, %v295_v12 }
 0x489   : > { %1874 = vst [vmem:[%s2902_s6 + $0x58] sm:$0xff] %v1828_v35 }
 0x48a   : > { %1872 = vst [vmem:[%s2902_s6 + $0x48] sm:$0xff] %v1820_v62 }
 0x494   : > { %v2169_v37 = vpop.f32.mrb[88].mxu1 }
 0x495   : > { %v1841_v38 = vadd.f32 %v2169_v37, %v295_v12  ;;  %v1832_v5 = vpop.f32.mrb[89].mxu1 }
 0x496   : > { %v1833_v29 = vadd.f32 %v1832_v5, %v295_v12  ;;  %v2170_v34 = vpop.f32.mrb[90].mxu1 }
 0x497   : > { %1877 = vst [vmem:[%s2902_s6 + $0x70] sm:$0xff] %v1841_v38  ;;  %v1844_v27 = vadd.f32 %v2170_v34, %v295_v12  ;;  %v1835_v39 = vpop.f32.mrb[91].mxu1 }
 0x498   : > { %1875 = vst [vmem:[%s2902_s6 + $0x60] sm:$0xff] %v1833_v29  ;;  %v1836_v42 = vadd.f32 %v1835_v39, %v295_v12 }
 0x499   : > { %1878 = vst [vmem:[%s2902_s6 + $0x78] sm:$0xff] %v1844_v27 }
 0x49a   : > { %1876 = vst [vmem:[%s2902_s6 + $0x68] sm:$0xff] %v1836_v42 }
 0x4a4   : > { %v2173_v2 = vpop.f32.mrb[92].mxu1 }
 0x4a5   : > { %v1857_v4 = vadd.f32 %v2173_v2, %v295_v12  ;;  %v1848_v9 = vpop.f32.mrb[93].mxu1 }
 0x4a6   : > { %v1849_v45 = vadd.f32 %v1848_v9, %v295_v12  ;;  %v2174_v48 = vpop.f32.mrb[94].mxu1 }
 0x4a7   : > { %1881 = vst [vmem:[%s2902_s6 + $0x90] sm:$0xff] %v1857_v4  ;;  %v1860_v11 = vadd.f32 %v2174_v48, %v295_v12  ;;  %v1851_v8 = vpop.f32.mrb[95].mxu1 }
 0x4a8   : > { %1879 = vst [vmem:[%s2902_s6 + $0x80] sm:$0xff] %v1849_v45  ;;  %v1852_v15 = vadd.f32 %v1851_v8, %v295_v12 }
 0x4a9   : > { %1882 = vst [vmem:[%s2902_s6 + $0x98] sm:$0xff] %v1860_v11 }
 0x4aa   : > { %1880 = vst [vmem:[%s2902_s6 + $0x88] sm:$0xff] %v1852_v15 }
 0x4ab PF: > { %s13_s12 = sadd.s32 1, %s2310_s12  }
 0x4ac   : > { %p10_p4 = scmp.ge.s32.totalorder %s13_s12, 4  }
 0x4ae   :  { %12 = sbr.rel (!%p10_p4) target bundleno = 1 (0x1), region = 64 }

</bundles_post_ra>
